<compile_context>
chip_gen: v6e
topology: v6e:2x2x1
jax: 0.10.0
libtpu: 0.0.40
codegen_flags: <defaults>
</compile_context>

<pallas_src>
import functools
import math

import jax
import jax.numpy as jnp
from jax.experimental import pallas as pl
from jax.experimental.pallas import tpu as pltpu


# ------------------------------ fused kernel -------------------------------

def _proj_block_kernel(x_ref,
                       ln1_g_ref, ln1_b_ref,
                       w_qkv_ref, b_qkv_ref,
                       w_out_ref, b_out_ref,
                       ln2_g_ref, ln2_b_ref,
                       w_fc_ref, b_fc_ref,
                       w_cproj_ref, b_cproj_ref,
                       w_lin_ref, b_lin_ref,
                       o_ref,
                       attn_ref,
                       *, num_heads, seq_len, batch_tile):
    x = x_ref[...].astype(jnp.float32)                     # (Bt*S, D)
    D = x.shape[-1]
    Dh = D // num_heads
    S = seq_len

    def layer_norm(v, g_ref, b_ref):
        mean = jnp.mean(v, axis=-1, keepdims=True)
        var = jnp.mean((v - mean) ** 2, axis=-1, keepdims=True)
        vn = (v - mean) * jax.lax.rsqrt(var + 1e-5)
        return vn * g_ref[...].astype(jnp.float32) + b_ref[...].astype(jnp.float32)

    # ---------------- x = x + MHA(LN1(x)) ----------------
    h1 = layer_norm(x, ln1_g_ref, ln1_b_ref)
    # One big QKV matmul over all packed rows (Bt*S rows on the MXU at once).
    qkv = jnp.dot(h1.astype(jnp.bfloat16), w_qkv_ref[...],
                  preferred_element_type=jnp.float32)
    qkv = qkv + b_qkv_ref[...].astype(jnp.float32)         # (Bt*S, 3D); Q pre-scaled

    # Attention is independent per packed batch element.  Per-head outputs go
    # straight into VMEM scratch (no concatenate).
    for b in range(batch_tile):                             # static loops
        r0, r1 = b * S, (b + 1) * S
        for h in range(num_heads):
            c0, c1 = h * Dh, (h + 1) * Dh
            q = qkv[r0:r1, c0:c1].astype(jnp.bfloat16)              # (S, Dh)
            k = qkv[r0:r1, D + c0:D + c1].astype(jnp.bfloat16)      # (S, Dh)
            v = qkv[r0:r1, 2 * D + c0:2 * D + c1].astype(jnp.bfloat16)
            # scores = q @ k.T without an explicit transpose (contract dim 1 of both)
            s = jax.lax.dot_general(q, k, (((1,), (1,)), ((), ())),
                                    preferred_element_type=jnp.float32)  # (S, S)
            s = s - jnp.max(s, axis=-1, keepdims=True)
            p = jnp.exp(s)
            p = p * pl.reciprocal(jnp.sum(p, axis=-1, keepdims=True), approx=True)
            attn_ref[r0:r1, c0:c1] = jnp.dot(p.astype(jnp.bfloat16), v,
                                             preferred_element_type=jnp.float32)

    attn = jnp.dot(attn_ref[...].astype(jnp.bfloat16), w_out_ref[...],
                   preferred_element_type=jnp.float32)
    attn = attn + b_out_ref[...].astype(jnp.float32)
    x = x + attn                                            # residual

    # ---------------- x = x + MLP(LN2(x)) ----------------
    h2 = layer_norm(x, ln2_g_ref, ln2_b_ref)
    fc = jnp.dot(h2.astype(jnp.bfloat16), w_fc_ref[...],
                 preferred_element_type=jnp.float32)
    fc = fc + b_fc_ref[...].astype(jnp.float32)
    fc = fc * jax.nn.sigmoid(1.702 * fc)                    # QuickGELU
    mlp = jnp.dot(fc.astype(jnp.bfloat16), w_cproj_ref[...],
                  preferred_element_type=jnp.float32)
    mlp = mlp + b_cproj_ref[...].astype(jnp.float32)
    x = x + mlp                                             # residual

    # ---------------- final nn.Linear(D, 768) ----------------
    out = jnp.dot(x.astype(jnp.bfloat16), w_lin_ref[...],
                  preferred_element_type=jnp.float32)
    o_ref[...] = (out + b_lin_ref[...].astype(jnp.float32)).astype(o_ref.dtype)


# ------------------------------ Proj forward -------------------------------

def _choose_batch_tile(B, S, target_rows=256, max_rows=1024):
    """Largest useful batch pack: smallest divisor of B reaching target_rows,
    else the largest divisor of B whose packed row count stays <= max_rows."""
    divisors = [d for d in range(1, B + 1) if B % d == 0]
    for d in divisors:
        if target_rows <= d * S <= max_rows:
            return d
    ok = [d for d in divisors if d * S <= max_rows]
    return ok[-1] if ok else 1


def proj_forward(x, params, *, num_heads, batch_tile=None):
    """x: (B, S, D) float32 -> (B, S, 768) float32.  num_heads is static.
    `params` must come from `prepare_params` (bf16 weights, scale folded)."""
    B, S, D = x.shape
    out_dim = params["w_lin"].shape[1]
    assert D % num_heads == 0
    if batch_tile is None:
        batch_tile = _choose_batch_tile(B, S)
    assert B % batch_tile == 0
    rows = batch_tile * S

    # Layout-only flatten of the batch/seq axes (like the torch permutes,
    # attention itself stays per-batch-element inside the kernel).
    x2 = x.reshape(B * S, D)

    kernel = functools.partial(_proj_block_kernel,
                               num_heads=num_heads,
                               seq_len=S,
                               batch_tile=batch_tile)

    def rep(shape):
        # replicated (weight) block: same full tile for every grid step
        return pl.BlockSpec(shape, lambda i: tuple(0 for _ in shape))

    out2 = pl.pallas_call(
        kernel,
        out_shape=jax.ShapeDtypeStruct((B * S, out_dim), x.dtype),
        grid=(B // batch_tile,),
        in_specs=[
            pl.BlockSpec((rows, D), lambda i: (i, 0)),      # x (packed rows)
            rep((1, D)), rep((1, D)),                       # ln1 gamma/beta
            rep((D, 3 * D)), rep((1, 3 * D)),               # qkv proj (bf16 W)
            rep((D, D)), rep((1, D)),                       # out proj
            rep((1, D)), rep((1, D)),                       # ln2 gamma/beta
            rep((D, 4 * D)), rep((1, 4 * D)),               # mlp c_fc
            rep((4 * D, D)), rep((1, D)),                   # mlp c_proj
            rep((D, out_dim)), rep((1, out_dim)),           # final linear
        ],
        out_specs=pl.BlockSpec((rows, out_dim), lambda i: (i, 0)),
        scratch_shapes=[pltpu.VMEM((rows, D), jnp.float32)],   # per-head attn slab
        compiler_params=pltpu.CompilerParams(
            dimension_semantics=("parallel",),
            vmem_limit_bytes=64 * 1024 * 1024),
    )(
        x2,
        params["ln1_g"], params["ln1_b"],
        params["w_qkv"], params["b_qkv"],
        params["w_out"], params["b_out"],
        params["ln2_g"], params["ln2_b"],
        params["w_fc"], params["b_fc"],
        params["w_cproj"], params["b_cproj"],
        params["w_lin"], params["b_lin"],
    )
    return out2.reshape(B, S, out_dim)


# --------------------------- parameter construction -------------------------

def make_params(key, D, out_dim=768):
    """f32 parameters matching the torch module layout ((in, out) for x @ W)."""
    ks = jax.random.split(key, 10)
    s = 0.02

    def w(k, shape):
        return (s * jax.random.normal(k, shape)).astype(jnp.float32)

    return {
        "ln1_g": jnp.ones((1, D), jnp.float32),
        "ln1_b": jnp.zeros((1, D), jnp.float32),
        "ln2_g": jnp.ones((1, D), jnp.float32),
        "ln2_b": jnp.zeros((1, D), jnp.float32),
        "w_qkv": w(ks[0], (D, 3 * D)),
        "b_qkv": w(ks[1], (1, 3 * D)),
        "w_out": w(ks[2], (D, D)),
        "b_out": w(ks[3], (1, D)),
        "w_fc": w(ks[4], (D, 4 * D)),
        "b_fc": w(ks[5], (1, 4 * D)),
        "w_cproj": w(ks[6], (4 * D, D)),
        "b_cproj": w(ks[7], (1, D)),
        "w_lin": w(ks[8], (D, out_dim)),
        "b_lin": w(ks[9], (1, out_dim)),
    }


def prepare_params(params, *, num_heads):
    """One-time (outside jit) transform:
      * fold the 1/sqrt(Dh) attention scale into the Q third of w_qkv / b_qkv,
      * pre-cast all weight matrices to bf16 (biases / LN params stay f32)."""
    D = params["w_qkv"].shape[0]
    Dh = D // num_heads
    scale = 1.0 / math.sqrt(Dh)
    p = dict(params)
    p["w_qkv"] = params["w_qkv"].at[:, :D].multiply(scale).astype(jnp.bfloat16)
    p["b_qkv"] = params["b_qkv"].at[:, :D].multiply(scale)
    for k in ("w_out", "w_fc", "w_cproj", "w_lin"):
        p[k] = params[k].astype(jnp.bfloat16)
    return p


# ----------------------------------- main -----------------------------------

if __name__ == "__main__":
    B, S, D, H = 2, 8, 32, 4       # batch, seq, encoder_output_size, num_head
    key = jax.random.PRNGKey(0)
    k_x, k_p = jax.random.split(key)

    x = jax.random.normal(k_x, (B, S, D), dtype=jnp.float32)
    params = prepare_params(make_params(k_p, D, out_dim=768), num_heads=H)

    fwd = jax.jit(functools.partial(proj_forward, num_heads=H))
    out = jax.block_until_ready(fwd(x, params))

    assert out.shape == (B, S, 768), out.shape
    assert jnp.all(jnp.isfinite(out))
    print("KERNEL_OK")
</pallas_src>

<mosaic_0001>
module attributes {stable_mosaic.version = 11 : i64} {
  func.func @_proj_block_kernel(%arg0: i32, %arg1: memref<16x32xf32, #tpu.memory_space<vmem>>, %arg2: memref<1x32xf32, #tpu.memory_space<vmem>>, %arg3: memref<1x32xf32, #tpu.memory_space<vmem>>, %arg4: memref<32x96xbf16, #tpu.memory_space<vmem>>, %arg5: memref<1x96xf32, #tpu.memory_space<vmem>>, %arg6: memref<32x32xbf16, #tpu.memory_space<vmem>>, %arg7: memref<1x32xf32, #tpu.memory_space<vmem>>, %arg8: memref<1x32xf32, #tpu.memory_space<vmem>>, %arg9: memref<1x32xf32, #tpu.memory_space<vmem>>, %arg10: memref<32x128xbf16, #tpu.memory_space<vmem>>, %arg11: memref<1x128xf32, #tpu.memory_space<vmem>>, %arg12: memref<128x32xbf16, #tpu.memory_space<vmem>>, %arg13: memref<1x32xf32, #tpu.memory_space<vmem>>, %arg14: memref<32x768xbf16, #tpu.memory_space<vmem>>, %arg15: memref<1x768xf32, #tpu.memory_space<vmem>>, %arg16: memref<16x768xf32, #tpu.memory_space<vmem>>, %arg17: memref<16x32xf32, #tpu.memory_space<vmem>>) attributes {dimension_semantics = [#tpu.dimension_semantics<parallel>], iteration_bounds = array<i64: 1>, scalar_prefetch = 0 : i64, scratch_operands = 1 : i64, tpu.core_type = #tpu.core_type<tc>, window_params = [{transform_indices = @transform_0, window_bounds = array<i64: 16, 32>}, {pipeline_mode = #tpu.pipeline_mode<synchronous>, transform_indices = @transform_1, window_bounds = array<i64: 1, 32>}, {pipeline_mode = #tpu.pipeline_mode<synchronous>, transform_indices = @transform_2, window_bounds = array<i64: 1, 32>}, {pipeline_mode = #tpu.pipeline_mode<synchronous>, transform_indices = @transform_3, window_bounds = array<i64: 32, 96>}, {pipeline_mode = #tpu.pipeline_mode<synchronous>, transform_indices = @transform_4, window_bounds = array<i64: 1, 96>}, {pipeline_mode = #tpu.pipeline_mode<synchronous>, transform_indices = @transform_5, window_bounds = array<i64: 32, 32>}, {pipeline_mode = #tpu.pipeline_mode<synchronous>, transform_indices = @transform_6, window_bounds = array<i64: 1, 32>}, {pipeline_mode = #tpu.pipeline_mode<synchronous>, transform_indices = @transform_7, window_bounds = array<i64: 1, 32>}, {pipeline_mode = #tpu.pipeline_mode<synchronous>, transform_indices = @transform_8, window_bounds = array<i64: 1, 32>}, {pipeline_mode = #tpu.pipeline_mode<synchronous>, transform_indices = @transform_9, window_bounds = array<i64: 32, 128>}, {pipeline_mode = #tpu.pipeline_mode<synchronous>, transform_indices = @transform_10, window_bounds = array<i64: 1, 128>}, {pipeline_mode = #tpu.pipeline_mode<synchronous>, transform_indices = @transform_11, window_bounds = array<i64: 128, 32>}, {pipeline_mode = #tpu.pipeline_mode<synchronous>, transform_indices = @transform_12, window_bounds = array<i64: 1, 32>}, {pipeline_mode = #tpu.pipeline_mode<synchronous>, transform_indices = @transform_13, window_bounds = array<i64: 32, 768>}, {pipeline_mode = #tpu.pipeline_mode<synchronous>, transform_indices = @transform_14, window_bounds = array<i64: 1, 768>}, {transform_indices = @transform_15, window_bounds = array<i64: 16, 768>}]} {
    %c0 = arith.constant 0 : index
    %c0_0 = arith.constant 0 : index
    %0 = vector.load %arg1[%c0, %c0_0] : memref<16x32xf32, #tpu.memory_space<vmem>>, vector<16x32xf32>
    %cst = arith.constant dense<0.000000e+00> : vector<16xf32>
    %1 = vector.multi_reduction <add>, %0, %cst [1] : vector<16x32xf32> to vector<16xf32>
    %2 = vector.shape_cast %1 : vector<16xf32> to vector<16x1xf32>
    %cst_1 = arith.constant 3.200000e+01 : f32
    %3 = vector.broadcast %cst_1 : f32 to vector<16x1xf32>
    %4 = arith.divf %2, %3 : vector<16x1xf32>
    %5 = vector.broadcast %4 : vector<16x1xf32> to vector<16x32xf32>
    %6 = arith.subf %0, %5 : vector<16x32xf32>
    %7 = arith.mulf %6, %6 : vector<16x32xf32>
    %cst_2 = arith.constant dense<0.000000e+00> : vector<16xf32>
    %8 = vector.multi_reduction <add>, %7, %cst_2 [1] : vector<16x32xf32> to vector<16xf32>
    %9 = vector.shape_cast %8 : vector<16xf32> to vector<16x1xf32>
    %cst_3 = arith.constant 3.200000e+01 : f32
    %10 = vector.broadcast %cst_3 : f32 to vector<16x1xf32>
    %11 = arith.divf %9, %10 : vector<16x1xf32>
    %12 = vector.broadcast %4 : vector<16x1xf32> to vector<16x32xf32>
    %13 = arith.subf %0, %12 : vector<16x32xf32>
    %cst_4 = arith.constant 9.99999974E-6 : f32
    %14 = vector.broadcast %cst_4 : f32 to vector<16x1xf32>
    %15 = arith.addf %11, %14 : vector<16x1xf32>
    %16 = math.rsqrt %15 : vector<16x1xf32>
    %17 = vector.broadcast %16 : vector<16x1xf32> to vector<16x32xf32>
    %18 = arith.mulf %13, %17 : vector<16x32xf32>
    %c0_5 = arith.constant 0 : index
    %c0_6 = arith.constant 0 : index
    %19 = vector.load %arg2[%c0_5, %c0_6] : memref<1x32xf32, #tpu.memory_space<vmem>>, vector<1x32xf32>
    %20 = vector.broadcast %19 : vector<1x32xf32> to vector<16x32xf32>
    %21 = arith.mulf %18, %20 : vector<16x32xf32>
    %c0_7 = arith.constant 0 : index
    %c0_8 = arith.constant 0 : index
    %22 = vector.load %arg3[%c0_7, %c0_8] : memref<1x32xf32, #tpu.memory_space<vmem>>, vector<1x32xf32>
    %23 = vector.broadcast %22 : vector<1x32xf32> to vector<16x32xf32>
    %24 = arith.addf %21, %23 : vector<16x32xf32>
    %25 = arith.truncf %24 : vector<16x32xf32> to vector<16x32xbf16>
    %c0_9 = arith.constant 0 : index
    %c0_10 = arith.constant 0 : index
    %26 = vector.load %arg4[%c0_9, %c0_10] : memref<32x96xbf16, #tpu.memory_space<vmem>>, vector<32x96xbf16>
    %cst_11 = arith.constant dense<0.000000e+00> : vector<16x96xf32>
    %27 = tpu.matmul %25, %26, %cst_11 {dimension_numbers = #tpu.dot_dimension_numbers<[1], [0], [0], [1], [0, 0, 1, 1], [], []>} : vector<16x32xbf16>, vector<32x96xbf16>, vector<16x96xf32> -> vector<16x96xf32>
    %c0_12 = arith.constant 0 : index
    %c0_13 = arith.constant 0 : index
    %28 = vector.load %arg5[%c0_12, %c0_13] : memref<1x96xf32, #tpu.memory_space<vmem>>, vector<1x96xf32>
    %29 = vector.broadcast %28 : vector<1x96xf32> to vector<16x96xf32>
    %30 = arith.addf %27, %29 : vector<16x96xf32>
    %31 = vector.extract_strided_slice %30 {offsets = [0, 0], sizes = [8, 8], strides = [1, 1]} : vector<16x96xf32> to vector<8x8xf32>
    %32 = arith.truncf %31 : vector<8x8xf32> to vector<8x8xbf16>
    %33 = vector.extract_strided_slice %30 {offsets = [0, 32], sizes = [8, 8], strides = [1, 1]} : vector<16x96xf32> to vector<8x8xf32>
    %34 = arith.truncf %33 : vector<8x8xf32> to vector<8x8xbf16>
    %35 = vector.extract_strided_slice %30 {offsets = [0, 64], sizes = [8, 8], strides = [1, 1]} : vector<16x96xf32> to vector<8x8xf32>
    %36 = arith.truncf %35 : vector<8x8xf32> to vector<8x8xbf16>
    %cst_14 = arith.constant dense<0.000000e+00> : vector<8x8xf32>
    %37 = tpu.matmul %32, %34, %cst_14 {dimension_numbers = #tpu.dot_dimension_numbers<[1], [1], [0], [0], [0, 0, 1, 0], [], []>} : vector<8x8xbf16>, vector<8x8xbf16>, vector<8x8xf32> -> vector<8x8xf32>
    %cst_15 = arith.constant dense<0xFF800000> : vector<8xf32>
    %38 = vector.multi_reduction <maximumf>, %37, %cst_15 [1] : vector<8x8xf32> to vector<8xf32>
    %39 = vector.shape_cast %38 : vector<8xf32> to vector<8x1xf32>
    %40 = vector.broadcast %39 : vector<8x1xf32> to vector<8x8xf32>
    %41 = arith.subf %37, %40 : vector<8x8xf32>
    %42 = math.exp %41 : vector<8x8xf32>
    %cst_16 = arith.constant dense<0.000000e+00> : vector<8xf32>
    %43 = vector.multi_reduction <add>, %42, %cst_16 [1] : vector<8x8xf32> to vector<8xf32>
    %44 = vector.shape_cast %43 : vector<8xf32> to vector<8x1xf32>
    %45 = tpu.reciprocal %44 {approx = true} : vector<8x1xf32> -> vector<8x1xf32>
    %46 = vector.broadcast %45 : vector<8x1xf32> to vector<8x8xf32>
    %47 = arith.mulf %42, %46 : vector<8x8xf32>
    %48 = arith.truncf %47 : vector<8x8xf32> to vector<8x8xbf16>
    %cst_17 = arith.constant dense<0.000000e+00> : vector<8x8xf32>
    %49 = tpu.matmul %48, %36, %cst_17 {dimension_numbers = #tpu.dot_dimension_numbers<[1], [0], [0], [1], [0, 0, 1, 1], [], []>} : vector<8x8xbf16>, vector<8x8xbf16>, vector<8x8xf32> -> vector<8x8xf32>
    %c0_18 = arith.constant 0 : index
    %c0_19 = arith.constant 0 : index
    %50 = vector.load %arg17[%c0_18, %c0_19] : memref<16x32xf32, #tpu.memory_space<vmem>>, vector<8x8xf32>
    tpu.vector_store %arg17[%c0_18, %c0_19], %49 {strides = array<i32>} : memref<16x32xf32, #tpu.memory_space<vmem>>, vector<8x8xf32>,
    %51 = vector.extract_strided_slice %30 {offsets = [0, 8], sizes = [8, 8], strides = [1, 1]} : vector<16x96xf32> to vector<8x8xf32>
    %52 = arith.truncf %51 : vector<8x8xf32> to vector<8x8xbf16>
    %53 = vector.extract_strided_slice %30 {offsets = [0, 40], sizes = [8, 8], strides = [1, 1]} : vector<16x96xf32> to vector<8x8xf32>
    %54 = arith.truncf %53 : vector<8x8xf32> to vector<8x8xbf16>
    %55 = vector.extract_strided_slice %30 {offsets = [0, 72], sizes = [8, 8], strides = [1, 1]} : vector<16x96xf32> to vector<8x8xf32>
    %56 = arith.truncf %55 : vector<8x8xf32> to vector<8x8xbf16>
    %cst_20 = arith.constant dense<0.000000e+00> : vector<8x8xf32>
    %57 = tpu.matmul %52, %54, %cst_20 {dimension_numbers = #tpu.dot_dimension_numbers<[1], [1], [0], [0], [0, 0, 1, 0], [], []>} : vector<8x8xbf16>, vector<8x8xbf16>, vector<8x8xf32> -> vector<8x8xf32>
    %cst_21 = arith.constant dense<0xFF800000> : vector<8xf32>
    %58 = vector.multi_reduction <maximumf>, %57, %cst_21 [1] : vector<8x8xf32> to vector<8xf32>
    %59 = vector.shape_cast %58 : vector<8xf32> to vector<8x1xf32>
    %60 = vector.broadcast %59 : vector<8x1xf32> to vector<8x8xf32>
    %61 = arith.subf %57, %60 : vector<8x8xf32>
    %62 = math.exp %61 : vector<8x8xf32>
    %cst_22 = arith.constant dense<0.000000e+00> : vector<8xf32>
    %63 = vector.multi_reduction <add>, %62, %cst_22 [1] : vector<8x8xf32> to vector<8xf32>
    %64 = vector.shape_cast %63 : vector<8xf32> to vector<8x1xf32>
    %65 = tpu.reciprocal %64 {approx = true} : vector<8x1xf32> -> vector<8x1xf32>
    %66 = vector.broadcast %65 : vector<8x1xf32> to vector<8x8xf32>
    %67 = arith.mulf %62, %66 : vector<8x8xf32>
    %68 = arith.truncf %67 : vector<8x8xf32> to vector<8x8xbf16>
    %cst_23 = arith.constant dense<0.000000e+00> : vector<8x8xf32>
    %69 = tpu.matmul %68, %56, %cst_23 {dimension_numbers = #tpu.dot_dimension_numbers<[1], [0], [0], [1], [0, 0, 1, 1], [], []>} : vector<8x8xbf16>, vector<8x8xbf16>, vector<8x8xf32> -> vector<8x8xf32>
    %c0_24 = arith.constant 0 : index
    %c8 = arith.constant 8 : index
    %70 = vector.load %arg17[%c0_24, %c8] : memref<16x32xf32, #tpu.memory_space<vmem>>, vector<8x8xf32>
    tpu.vector_store %arg17[%c0_24, %c8], %69 {strides = array<i32>} : memref<16x32xf32, #tpu.memory_space<vmem>>, vector<8x8xf32>,
    %71 = vector.extract_strided_slice %30 {offsets = [0, 16], sizes = [8, 8], strides = [1, 1]} : vector<16x96xf32> to vector<8x8xf32>
    %72 = arith.truncf %71 : vector<8x8xf32> to vector<8x8xbf16>
    %73 = vector.extract_strided_slice %30 {offsets = [0, 48], sizes = [8, 8], strides = [1, 1]} : vector<16x96xf32> to vector<8x8xf32>
    %74 = arith.truncf %73 : vector<8x8xf32> to vector<8x8xbf16>
    %75 = vector.extract_strided_slice %30 {offsets = [0, 80], sizes = [8, 8], strides = [1, 1]} : vector<16x96xf32> to vector<8x8xf32>
    %76 = arith.truncf %75 : vector<8x8xf32> to vector<8x8xbf16>
    %cst_25 = arith.constant dense<0.000000e+00> : vector<8x8xf32>
    %77 = tpu.matmul %72, %74, %cst_25 {dimension_numbers = #tpu.dot_dimension_numbers<[1], [1], [0], [0], [0, 0, 1, 0], [], []>} : vector<8x8xbf16>, vector<8x8xbf16>, vector<8x8xf32> -> vector<8x8xf32>
    %cst_26 = arith.constant dense<0xFF800000> : vector<8xf32>
    %78 = vector.multi_reduction <maximumf>, %77, %cst_26 [1] : vector<8x8xf32> to vector<8xf32>
    %79 = vector.shape_cast %78 : vector<8xf32> to vector<8x1xf32>
    %80 = vector.broadcast %79 : vector<8x1xf32> to vector<8x8xf32>
    %81 = arith.subf %77, %80 : vector<8x8xf32>
    %82 = math.exp %81 : vector<8x8xf32>
    %cst_27 = arith.constant dense<0.000000e+00> : vector<8xf32>
    %83 = vector.multi_reduction <add>, %82, %cst_27 [1] : vector<8x8xf32> to vector<8xf32>
    %84 = vector.shape_cast %83 : vector<8xf32> to vector<8x1xf32>
    %85 = tpu.reciprocal %84 {approx = true} : vector<8x1xf32> -> vector<8x1xf32>
    %86 = vector.broadcast %85 : vector<8x1xf32> to vector<8x8xf32>
    %87 = arith.mulf %82, %86 : vector<8x8xf32>
    %88 = arith.truncf %87 : vector<8x8xf32> to vector<8x8xbf16>
    %cst_28 = arith.constant dense<0.000000e+00> : vector<8x8xf32>
    %89 = tpu.matmul %88, %76, %cst_28 {dimension_numbers = #tpu.dot_dimension_numbers<[1], [0], [0], [1], [0, 0, 1, 1], [], []>} : vector<8x8xbf16>, vector<8x8xbf16>, vector<8x8xf32> -> vector<8x8xf32>
    %c0_29 = arith.constant 0 : index
    %c16 = arith.constant 16 : index
    %90 = vector.load %arg17[%c0_29, %c16] : memref<16x32xf32, #tpu.memory_space<vmem>>, vector<8x8xf32>
    tpu.vector_store %arg17[%c0_29, %c16], %89 {strides = array<i32>} : memref<16x32xf32, #tpu.memory_space<vmem>>, vector<8x8xf32>,
    %91 = vector.extract_strided_slice %30 {offsets = [0, 24], sizes = [8, 8], strides = [1, 1]} : vector<16x96xf32> to vector<8x8xf32>
    %92 = arith.truncf %91 : vector<8x8xf32> to vector<8x8xbf16>
    %93 = vector.extract_strided_slice %30 {offsets = [0, 56], sizes = [8, 8], strides = [1, 1]} : vector<16x96xf32> to vector<8x8xf32>
    %94 = arith.truncf %93 : vector<8x8xf32> to vector<8x8xbf16>
    %95 = vector.extract_strided_slice %30 {offsets = [0, 88], sizes = [8, 8], strides = [1, 1]} : vector<16x96xf32> to vector<8x8xf32>
    %96 = arith.truncf %95 : vector<8x8xf32> to vector<8x8xbf16>
    %cst_30 = arith.constant dense<0.000000e+00> : vector<8x8xf32>
    %97 = tpu.matmul %92, %94, %cst_30 {dimension_numbers = #tpu.dot_dimension_numbers<[1], [1], [0], [0], [0, 0, 1, 0], [], []>} : vector<8x8xbf16>, vector<8x8xbf16>, vector<8x8xf32> -> vector<8x8xf32>
    %cst_31 = arith.constant dense<0xFF800000> : vector<8xf32>
    %98 = vector.multi_reduction <maximumf>, %97, %cst_31 [1] : vector<8x8xf32> to vector<8xf32>
    %99 = vector.shape_cast %98 : vector<8xf32> to vector<8x1xf32>
    %100 = vector.broadcast %99 : vector<8x1xf32> to vector<8x8xf32>
    %101 = arith.subf %97, %100 : vector<8x8xf32>
    %102 = math.exp %101 : vector<8x8xf32>
    %cst_32 = arith.constant dense<0.000000e+00> : vector<8xf32>
    %103 = vector.multi_reduction <add>, %102, %cst_32 [1] : vector<8x8xf32> to vector<8xf32>
    %104 = vector.shape_cast %103 : vector<8xf32> to vector<8x1xf32>
    %105 = tpu.reciprocal %104 {approx = true} : vector<8x1xf32> -> vector<8x1xf32>
    %106 = vector.broadcast %105 : vector<8x1xf32> to vector<8x8xf32>
    %107 = arith.mulf %102, %106 : vector<8x8xf32>
    %108 = arith.truncf %107 : vector<8x8xf32> to vector<8x8xbf16>
    %cst_33 = arith.constant dense<0.000000e+00> : vector<8x8xf32>
    %109 = tpu.matmul %108, %96, %cst_33 {dimension_numbers = #tpu.dot_dimension_numbers<[1], [0], [0], [1], [0, 0, 1, 1], [], []>} : vector<8x8xbf16>, vector<8x8xbf16>, vector<8x8xf32> -> vector<8x8xf32>
    %c0_34 = arith.constant 0 : index
    %c24 = arith.constant 24 : index
    %110 = vector.load %arg17[%c0_34, %c24] : memref<16x32xf32, #tpu.memory_space<vmem>>, vector<8x8xf32>
    tpu.vector_store %arg17[%c0_34, %c24], %109 {strides = array<i32>} : memref<16x32xf32, #tpu.memory_space<vmem>>, vector<8x8xf32>,
    %111 = vector.extract_strided_slice %30 {offsets = [8, 0], sizes = [8, 8], strides = [1, 1]} : vector<16x96xf32> to vector<8x8xf32>
    %112 = arith.truncf %111 : vector<8x8xf32> to vector<8x8xbf16>
    %113 = vector.extract_strided_slice %30 {offsets = [8, 32], sizes = [8, 8], strides = [1, 1]} : vector<16x96xf32> to vector<8x8xf32>
    %114 = arith.truncf %113 : vector<8x8xf32> to vector<8x8xbf16>
    %115 = vector.extract_strided_slice %30 {offsets = [8, 64], sizes = [8, 8], strides = [1, 1]} : vector<16x96xf32> to vector<8x8xf32>
    %116 = arith.truncf %115 : vector<8x8xf32> to vector<8x8xbf16>
    %cst_35 = arith.constant dense<0.000000e+00> : vector<8x8xf32>
    %117 = tpu.matmul %112, %114, %cst_35 {dimension_numbers = #tpu.dot_dimension_numbers<[1], [1], [0], [0], [0, 0, 1, 0], [], []>} : vector<8x8xbf16>, vector<8x8xbf16>, vector<8x8xf32> -> vector<8x8xf32>
    %cst_36 = arith.constant dense<0xFF800000> : vector<8xf32>
    %118 = vector.multi_reduction <maximumf>, %117, %cst_36 [1] : vector<8x8xf32> to vector<8xf32>
    %119 = vector.shape_cast %118 : vector<8xf32> to vector<8x1xf32>
    %120 = vector.broadcast %119 : vector<8x1xf32> to vector<8x8xf32>
    %121 = arith.subf %117, %120 : vector<8x8xf32>
    %122 = math.exp %121 : vector<8x8xf32>
    %cst_37 = arith.constant dense<0.000000e+00> : vector<8xf32>
    %123 = vector.multi_reduction <add>, %122, %cst_37 [1] : vector<8x8xf32> to vector<8xf32>
    %124 = vector.shape_cast %123 : vector<8xf32> to vector<8x1xf32>
    %125 = tpu.reciprocal %124 {approx = true} : vector<8x1xf32> -> vector<8x1xf32>
    %126 = vector.broadcast %125 : vector<8x1xf32> to vector<8x8xf32>
    %127 = arith.mulf %122, %126 : vector<8x8xf32>
    %128 = arith.truncf %127 : vector<8x8xf32> to vector<8x8xbf16>
    %cst_38 = arith.constant dense<0.000000e+00> : vector<8x8xf32>
    %129 = tpu.matmul %128, %116, %cst_38 {dimension_numbers = #tpu.dot_dimension_numbers<[1], [0], [0], [1], [0, 0, 1, 1], [], []>} : vector<8x8xbf16>, vector<8x8xbf16>, vector<8x8xf32> -> vector<8x8xf32>
    %c8_39 = arith.constant 8 : index
    %c0_40 = arith.constant 0 : index
    %130 = vector.load %arg17[%c8_39, %c0_40] : memref<16x32xf32, #tpu.memory_space<vmem>>, vector<8x8xf32>
    tpu.vector_store %arg17[%c8_39, %c0_40], %129 {strides = array<i32>} : memref<16x32xf32, #tpu.memory_space<vmem>>, vector<8x8xf32>,
    %131 = vector.extract_strided_slice %30 {offsets = [8, 8], sizes = [8, 8], strides = [1, 1]} : vector<16x96xf32> to vector<8x8xf32>
    %132 = arith.truncf %131 : vector<8x8xf32> to vector<8x8xbf16>
    %133 = vector.extract_strided_slice %30 {offsets = [8, 40], sizes = [8, 8], strides = [1, 1]} : vector<16x96xf32> to vector<8x8xf32>
    %134 = arith.truncf %133 : vector<8x8xf32> to vector<8x8xbf16>
    %135 = vector.extract_strided_slice %30 {offsets = [8, 72], sizes = [8, 8], strides = [1, 1]} : vector<16x96xf32> to vector<8x8xf32>
    %136 = arith.truncf %135 : vector<8x8xf32> to vector<8x8xbf16>
    %cst_41 = arith.constant dense<0.000000e+00> : vector<8x8xf32>
    %137 = tpu.matmul %132, %134, %cst_41 {dimension_numbers = #tpu.dot_dimension_numbers<[1], [1], [0], [0], [0, 0, 1, 0], [], []>} : vector<8x8xbf16>, vector<8x8xbf16>, vector<8x8xf32> -> vector<8x8xf32>
    %cst_42 = arith.constant dense<0xFF800000> : vector<8xf32>
    %138 = vector.multi_reduction <maximumf>, %137, %cst_42 [1] : vector<8x8xf32> to vector<8xf32>
    %139 = vector.shape_cast %138 : vector<8xf32> to vector<8x1xf32>
    %140 = vector.broadcast %139 : vector<8x1xf32> to vector<8x8xf32>
    %141 = arith.subf %137, %140 : vector<8x8xf32>
    %142 = math.exp %141 : vector<8x8xf32>
    %cst_43 = arith.constant dense<0.000000e+00> : vector<8xf32>
    %143 = vector.multi_reduction <add>, %142, %cst_43 [1] : vector<8x8xf32> to vector<8xf32>
    %144 = vector.shape_cast %143 : vector<8xf32> to vector<8x1xf32>
    %145 = tpu.reciprocal %144 {approx = true} : vector<8x1xf32> -> vector<8x1xf32>
    %146 = vector.broadcast %145 : vector<8x1xf32> to vector<8x8xf32>
    %147 = arith.mulf %142, %146 : vector<8x8xf32>
    %148 = arith.truncf %147 : vector<8x8xf32> to vector<8x8xbf16>
    %cst_44 = arith.constant dense<0.000000e+00> : vector<8x8xf32>
    %149 = tpu.matmul %148, %136, %cst_44 {dimension_numbers = #tpu.dot_dimension_numbers<[1], [0], [0], [1], [0, 0, 1, 1], [], []>} : vector<8x8xbf16>, vector<8x8xbf16>, vector<8x8xf32> -> vector<8x8xf32>
    %c8_45 = arith.constant 8 : index
    %c8_46 = arith.constant 8 : index
    %150 = vector.load %arg17[%c8_45, %c8_46] : memref<16x32xf32, #tpu.memory_space<vmem>>, vector<8x8xf32>
    tpu.vector_store %arg17[%c8_45, %c8_46], %149 {strides = array<i32>} : memref<16x32xf32, #tpu.memory_space<vmem>>, vector<8x8xf32>,
    %151 = vector.extract_strided_slice %30 {offsets = [8, 16], sizes = [8, 8], strides = [1, 1]} : vector<16x96xf32> to vector<8x8xf32>
    %152 = arith.truncf %151 : vector<8x8xf32> to vector<8x8xbf16>
    %153 = vector.extract_strided_slice %30 {offsets = [8, 48], sizes = [8, 8], strides = [1, 1]} : vector<16x96xf32> to vector<8x8xf32>
    %154 = arith.truncf %153 : vector<8x8xf32> to vector<8x8xbf16>
    %155 = vector.extract_strided_slice %30 {offsets = [8, 80], sizes = [8, 8], strides = [1, 1]} : vector<16x96xf32> to vector<8x8xf32>
    %156 = arith.truncf %155 : vector<8x8xf32> to vector<8x8xbf16>
    %cst_47 = arith.constant dense<0.000000e+00> : vector<8x8xf32>
    %157 = tpu.matmul %152, %154, %cst_47 {dimension_numbers = #tpu.dot_dimension_numbers<[1], [1], [0], [0], [0, 0, 1, 0], [], []>} : vector<8x8xbf16>, vector<8x8xbf16>, vector<8x8xf32> -> vector<8x8xf32>
    %cst_48 = arith.constant dense<0xFF800000> : vector<8xf32>
    %158 = vector.multi_reduction <maximumf>, %157, %cst_48 [1] : vector<8x8xf32> to vector<8xf32>
    %159 = vector.shape_cast %158 : vector<8xf32> to vector<8x1xf32>
    %160 = vector.broadcast %159 : vector<8x1xf32> to vector<8x8xf32>
    %161 = arith.subf %157, %160 : vector<8x8xf32>
    %162 = math.exp %161 : vector<8x8xf32>
    %cst_49 = arith.constant dense<0.000000e+00> : vector<8xf32>
    %163 = vector.multi_reduction <add>, %162, %cst_49 [1] : vector<8x8xf32> to vector<8xf32>
    %164 = vector.shape_cast %163 : vector<8xf32> to vector<8x1xf32>
    %165 = tpu.reciprocal %164 {approx = true} : vector<8x1xf32> -> vector<8x1xf32>
    %166 = vector.broadcast %165 : vector<8x1xf32> to vector<8x8xf32>
    %167 = arith.mulf %162, %166 : vector<8x8xf32>
    %168 = arith.truncf %167 : vector<8x8xf32> to vector<8x8xbf16>
    %cst_50 = arith.constant dense<0.000000e+00> : vector<8x8xf32>
    %169 = tpu.matmul %168, %156, %cst_50 {dimension_numbers = #tpu.dot_dimension_numbers<[1], [0], [0], [1], [0, 0, 1, 1], [], []>} : vector<8x8xbf16>, vector<8x8xbf16>, vector<8x8xf32> -> vector<8x8xf32>
    %c8_51 = arith.constant 8 : index
    %c16_52 = arith.constant 16 : index
    %170 = vector.load %arg17[%c8_51, %c16_52] : memref<16x32xf32, #tpu.memory_space<vmem>>, vector<8x8xf32>
    tpu.vector_store %arg17[%c8_51, %c16_52], %169 {strides = array<i32>} : memref<16x32xf32, #tpu.memory_space<vmem>>, vector<8x8xf32>,
    %171 = vector.extract_strided_slice %30 {offsets = [8, 24], sizes = [8, 8], strides = [1, 1]} : vector<16x96xf32> to vector<8x8xf32>
    %172 = arith.truncf %171 : vector<8x8xf32> to vector<8x8xbf16>
    %173 = vector.extract_strided_slice %30 {offsets = [8, 56], sizes = [8, 8], strides = [1, 1]} : vector<16x96xf32> to vector<8x8xf32>
    %174 = arith.truncf %173 : vector<8x8xf32> to vector<8x8xbf16>
    %175 = vector.extract_strided_slice %30 {offsets = [8, 88], sizes = [8, 8], strides = [1, 1]} : vector<16x96xf32> to vector<8x8xf32>
    %176 = arith.truncf %175 : vector<8x8xf32> to vector<8x8xbf16>
    %cst_53 = arith.constant dense<0.000000e+00> : vector<8x8xf32>
    %177 = tpu.matmul %172, %174, %cst_53 {dimension_numbers = #tpu.dot_dimension_numbers<[1], [1], [0], [0], [0, 0, 1, 0], [], []>} : vector<8x8xbf16>, vector<8x8xbf16>, vector<8x8xf32> -> vector<8x8xf32>
    %cst_54 = arith.constant dense<0xFF800000> : vector<8xf32>
    %178 = vector.multi_reduction <maximumf>, %177, %cst_54 [1] : vector<8x8xf32> to vector<8xf32>
    %179 = vector.shape_cast %178 : vector<8xf32> to vector<8x1xf32>
    %180 = vector.broadcast %179 : vector<8x1xf32> to vector<8x8xf32>
    %181 = arith.subf %177, %180 : vector<8x8xf32>
    %182 = math.exp %181 : vector<8x8xf32>
    %cst_55 = arith.constant dense<0.000000e+00> : vector<8xf32>
    %183 = vector.multi_reduction <add>, %182, %cst_55 [1] : vector<8x8xf32> to vector<8xf32>
    %184 = vector.shape_cast %183 : vector<8xf32> to vector<8x1xf32>
    %185 = tpu.reciprocal %184 {approx = true} : vector<8x1xf32> -> vector<8x1xf32>
    %186 = vector.broadcast %185 : vector<8x1xf32> to vector<8x8xf32>
    %187 = arith.mulf %182, %186 : vector<8x8xf32>
    %188 = arith.truncf %187 : vector<8x8xf32> to vector<8x8xbf16>
    %cst_56 = arith.constant dense<0.000000e+00> : vector<8x8xf32>
    %189 = tpu.matmul %188, %176, %cst_56 {dimension_numbers = #tpu.dot_dimension_numbers<[1], [0], [0], [1], [0, 0, 1, 1], [], []>} : vector<8x8xbf16>, vector<8x8xbf16>, vector<8x8xf32> -> vector<8x8xf32>
    %c8_57 = arith.constant 8 : index
    %c24_58 = arith.constant 24 : index
    %190 = vector.load %arg17[%c8_57, %c24_58] : memref<16x32xf32, #tpu.memory_space<vmem>>, vector<8x8xf32>
    tpu.vector_store %arg17[%c8_57, %c24_58], %189 {strides = array<i32>} : memref<16x32xf32, #tpu.memory_space<vmem>>, vector<8x8xf32>,
    %c0_59 = arith.constant 0 : index
    %c0_60 = arith.constant 0 : index
    %191 = vector.load %arg17[%c0_59, %c0_60] : memref<16x32xf32, #tpu.memory_space<vmem>>, vector<16x32xf32>
    %192 = arith.truncf %191 : vector<16x32xf32> to vector<16x32xbf16>
    %c0_61 = arith.constant 0 : index
    %c0_62 = arith.constant 0 : index
    %193 = vector.load %arg6[%c0_61, %c0_62] : memref<32x32xbf16, #tpu.memory_space<vmem>>, vector<32x32xbf16>
    %cst_63 = arith.constant dense<0.000000e+00> : vector<16x32xf32>
    %194 = tpu.matmul %192, %193, %cst_63 {dimension_numbers = #tpu.dot_dimension_numbers<[1], [0], [0], [1], [0, 0, 1, 1], [], []>} : vector<16x32xbf16>, vector<32x32xbf16>, vector<16x32xf32> -> vector<16x32xf32>
    %c0_64 = arith.constant 0 : index
    %c0_65 = arith.constant 0 : index
    %195 = vector.load %arg7[%c0_64, %c0_65] : memref<1x32xf32, #tpu.memory_space<vmem>>, vector<1x32xf32>
    %196 = vector.broadcast %195 : vector<1x32xf32> to vector<16x32xf32>
    %197 = arith.addf %194, %196 : vector<16x32xf32>
    %198 = arith.addf %0, %197 : vector<16x32xf32>
    %cst_66 = arith.constant dense<0.000000e+00> : vector<16xf32>
    %199 = vector.multi_reduction <add>, %198, %cst_66 [1] : vector<16x32xf32> to vector<16xf32>
    %200 = vector.shape_cast %199 : vector<16xf32> to vector<16x1xf32>
    %cst_67 = arith.constant 3.200000e+01 : f32
    %201 = vector.broadcast %cst_67 : f32 to vector<16x1xf32>
    %202 = arith.divf %200, %201 : vector<16x1xf32>
    %203 = vector.broadcast %202 : vector<16x1xf32> to vector<16x32xf32>
    %204 = arith.subf %198, %203 : vector<16x32xf32>
    %205 = arith.mulf %204, %204 : vector<16x32xf32>
    %cst_68 = arith.constant dense<0.000000e+00> : vector<16xf32>
    %206 = vector.multi_reduction <add>, %205, %cst_68 [1] : vector<16x32xf32> to vector<16xf32>
    %207 = vector.shape_cast %206 : vector<16xf32> to vector<16x1xf32>
    %cst_69 = arith.constant 3.200000e+01 : f32
    %208 = vector.broadcast %cst_69 : f32 to vector<16x1xf32>
    %209 = arith.divf %207, %208 : vector<16x1xf32>
    %210 = vector.broadcast %202 : vector<16x1xf32> to vector<16x32xf32>
    %211 = arith.subf %198, %210 : vector<16x32xf32>
    %cst_70 = arith.constant 9.99999974E-6 : f32
    %212 = vector.broadcast %cst_70 : f32 to vector<16x1xf32>
    %213 = arith.addf %209, %212 : vector<16x1xf32>
    %214 = math.rsqrt %213 : vector<16x1xf32>
    %215 = vector.broadcast %214 : vector<16x1xf32> to vector<16x32xf32>
    %216 = arith.mulf %211, %215 : vector<16x32xf32>
    %c0_71 = arith.constant 0 : index
    %c0_72 = arith.constant 0 : index
    %217 = vector.load %arg8[%c0_71, %c0_72] : memref<1x32xf32, #tpu.memory_space<vmem>>, vector<1x32xf32>
    %218 = vector.broadcast %217 : vector<1x32xf32> to vector<16x32xf32>
    %219 = arith.mulf %216, %218 : vector<16x32xf32>
    %c0_73 = arith.constant 0 : index
    %c0_74 = arith.constant 0 : index
    %220 = vector.load %arg9[%c0_73, %c0_74] : memref<1x32xf32, #tpu.memory_space<vmem>>, vector<1x32xf32>
    %221 = vector.broadcast %220 : vector<1x32xf32> to vector<16x32xf32>
    %222 = arith.addf %219, %221 : vector<16x32xf32>
    %223 = arith.truncf %222 : vector<16x32xf32> to vector<16x32xbf16>
    %c0_75 = arith.constant 0 : index
    %c0_76 = arith.constant 0 : index
    %224 = vector.load %arg10[%c0_75, %c0_76] : memref<32x128xbf16, #tpu.memory_space<vmem>>, vector<32x128xbf16>
    %cst_77 = arith.constant dense<0.000000e+00> : vector<16x128xf32>
    %225 = tpu.matmul %223, %224, %cst_77 {dimension_numbers = #tpu.dot_dimension_numbers<[1], [0], [0], [1], [0, 0, 1, 1], [], []>} : vector<16x32xbf16>, vector<32x128xbf16>, vector<16x128xf32> -> vector<16x128xf32>
    %c0_78 = arith.constant 0 : index
    %c0_79 = arith.constant 0 : index
    %226 = vector.load %arg11[%c0_78, %c0_79] : memref<1x128xf32, #tpu.memory_space<vmem>>, vector<1x128xf32>
    %227 = vector.broadcast %226 : vector<1x128xf32> to vector<16x128xf32>
    %228 = arith.addf %225, %227 : vector<16x128xf32>
    %cst_80 = arith.constant 1.702000e+00 : f32
    %229 = vector.broadcast %cst_80 : f32 to vector<16x128xf32>
    %230 = arith.mulf %229, %228 : vector<16x128xf32>
    %231 = arith.negf %230 : vector<16x128xf32>
    %232 = math.exp %231 : vector<16x128xf32>
    %cst_81 = arith.constant 1.000000e+00 : f32
    %233 = vector.broadcast %cst_81 : f32 to vector<16x128xf32>
    %234 = arith.addf %233, %232 : vector<16x128xf32>
    %235 = arith.divf %233, %234 : vector<16x128xf32>
    %236 = arith.mulf %228, %235 : vector<16x128xf32>
    %237 = arith.truncf %236 : vector<16x128xf32> to vector<16x128xbf16>
    %c0_82 = arith.constant 0 : index
    %c0_83 = arith.constant 0 : index
    %238 = vector.load %arg12[%c0_82, %c0_83] : memref<128x32xbf16, #tpu.memory_space<vmem>>, vector<128x32xbf16>
    %cst_84 = arith.constant dense<0.000000e+00> : vector<16x32xf32>
    %239 = tpu.matmul %237, %238, %cst_84 {dimension_numbers = #tpu.dot_dimension_numbers<[1], [0], [0], [1], [0, 0, 1, 1], [], []>} : vector<16x128xbf16>, vector<128x32xbf16>, vector<16x32xf32> -> vector<16x32xf32>
    %c0_85 = arith.constant 0 : index
    %c0_86 = arith.constant 0 : index
    %240 = vector.load %arg13[%c0_85, %c0_86] : memref<1x32xf32, #tpu.memory_space<vmem>>, vector<1x32xf32>
    %241 = vector.broadcast %240 : vector<1x32xf32> to vector<16x32xf32>
    %242 = arith.addf %239, %241 : vector<16x32xf32>
    %243 = arith.addf %198, %242 : vector<16x32xf32>
    %244 = arith.truncf %243 : vector<16x32xf32> to vector<16x32xbf16>
    %c0_87 = arith.constant 0 : index
    %c0_88 = arith.constant 0 : index
    %245 = vector.load %arg14[%c0_87, %c0_88] : memref<32x768xbf16, #tpu.memory_space<vmem>>, vector<32x768xbf16>
    %cst_89 = arith.constant dense<0.000000e+00> : vector<16x768xf32>
    %246 = tpu.matmul %244, %245, %cst_89 {dimension_numbers = #tpu.dot_dimension_numbers<[1], [0], [0], [1], [0, 0, 1, 1], [], []>} : vector<16x32xbf16>, vector<32x768xbf16>, vector<16x768xf32> -> vector<16x768xf32>
    %c0_90 = arith.constant 0 : index
    %c0_91 = arith.constant 0 : index
    %247 = vector.load %arg15[%c0_90, %c0_91] : memref<1x768xf32, #tpu.memory_space<vmem>>, vector<1x768xf32>
    %248 = vector.broadcast %247 : vector<1x768xf32> to vector<16x768xf32>
    %249 = arith.addf %246, %248 : vector<16x768xf32>
    %c0_92 = arith.constant 0 : index
    %c0_93 = arith.constant 0 : index
    %250 = vector.load %arg16[%c0_92, %c0_93] : memref<16x768xf32, #tpu.memory_space<vmem>>, vector<16x768xf32>
    tpu.vector_store %arg16[%c0_92, %c0_93], %249 {strides = array<i32>} : memref<16x768xf32, #tpu.memory_space<vmem>>, vector<16x768xf32>,
    return
  }
  func.func @transform_0(%arg0: i32) -> (i32, i32) {
    %c0_i32 = arith.constant 0 : i32
    %c0_i32_0 = arith.constant 0 : i32
    return %arg0, %c0_i32 : i32, i32
  }
  func.func @transform_1(%arg0: i32) -> (i32, i32) {
    %c0_i32 = arith.constant 0 : i32
    %c0_i32_0 = arith.constant 0 : i32
    %c0_i32_1 = arith.constant 0 : i32
    return %c0_i32, %c0_i32_0 : i32, i32
  }
  func.func @transform_2(%arg0: i32) -> (i32, i32) {
    %c0_i32 = arith.constant 0 : i32
    %c0_i32_0 = arith.constant 0 : i32
    %c0_i32_1 = arith.constant 0 : i32
    return %c0_i32, %c0_i32_0 : i32, i32
  }
  func.func @transform_3(%arg0: i32) -> (i32, i32) {
    %c0_i32 = arith.constant 0 : i32
    %c0_i32_0 = arith.constant 0 : i32
    %c0_i32_1 = arith.constant 0 : i32
    return %c0_i32, %c0_i32_0 : i32, i32
  }
  func.func @transform_4(%arg0: i32) -> (i32, i32) {
    %c0_i32 = arith.constant 0 : i32
    %c0_i32_0 = arith.constant 0 : i32
    %c0_i32_1 = arith.constant 0 : i32
    return %c0_i32, %c0_i32_0 : i32, i32
  }
  func.func @transform_5(%arg0: i32) -> (i32, i32) {
    %c0_i32 = arith.constant 0 : i32
    %c0_i32_0 = arith.constant 0 : i32
    %c0_i32_1 = arith.constant 0 : i32
    return %c0_i32, %c0_i32_0 : i32, i32
  }
  func.func @transform_6(%arg0: i32) -> (i32, i32) {
    %c0_i32 = arith.constant 0 : i32
    %c0_i32_0 = arith.constant 0 : i32
    %c0_i32_1 = arith.constant 0 : i32
    return %c0_i32, %c0_i32_0 : i32, i32
  }
  func.func @transform_7(%arg0: i32) -> (i32, i32) {
    %c0_i32 = arith.constant 0 : i32
    %c0_i32_0 = arith.constant 0 : i32
    %c0_i32_1 = arith.constant 0 : i32
    return %c0_i32, %c0_i32_0 : i32, i32
  }
  func.func @transform_8(%arg0: i32) -> (i32, i32) {
    %c0_i32 = arith.constant 0 : i32
    %c0_i32_0 = arith.constant 0 : i32
    %c0_i32_1 = arith.constant 0 : i32
    return %c0_i32, %c0_i32_0 : i32, i32
  }
  func.func @transform_9(%arg0: i32) -> (i32, i32) {
    %c0_i32 = arith.constant 0 : i32
    %c0_i32_0 = arith.constant 0 : i32
    %c0_i32_1 = arith.constant 0 : i32
    return %c0_i32, %c0_i32_0 : i32, i32
  }
  func.func @transform_10(%arg0: i32) -> (i32, i32) {
    %c0_i32 = arith.constant 0 : i32
    %c0_i32_0 = arith.constant 0 : i32
    %c0_i32_1 = arith.constant 0 : i32
    return %c0_i32, %c0_i32_0 : i32, i32
  }
  func.func @transform_11(%arg0: i32) -> (i32, i32) {
    %c0_i32 = arith.constant 0 : i32
    %c0_i32_0 = arith.constant 0 : i32
    %c0_i32_1 = arith.constant 0 : i32
    return %c0_i32, %c0_i32_0 : i32, i32
  }
  func.func @transform_12(%arg0: i32) -> (i32, i32) {
    %c0_i32 = arith.constant 0 : i32
    %c0_i32_0 = arith.constant 0 : i32
    %c0_i32_1 = arith.constant 0 : i32
    return %c0_i32, %c0_i32_0 : i32, i32
  }
  func.func @transform_13(%arg0: i32) -> (i32, i32) {
    %c0_i32 = arith.constant 0 : i32
    %c0_i32_0 = arith.constant 0 : i32
    %c0_i32_1 = arith.constant 0 : i32
    return %c0_i32, %c0_i32_0 : i32, i32
  }
  func.func @transform_14(%arg0: i32) -> (i32, i32) {
    %c0_i32 = arith.constant 0 : i32
    %c0_i32_0 = arith.constant 0 : i32
    %c0_i32_1 = arith.constant 0 : i32
    return %c0_i32, %c0_i32_0 : i32, i32
  }
  func.func @transform_15(%arg0: i32) -> (i32, i32) {
    %c0_i32 = arith.constant 0 : i32
    %c0_i32_0 = arith.constant 0 : i32
    return %arg0, %c0_i32 : i32, i32
  }
}

</mosaic_0001>

<bundles_post_ra>
// kernel: proj_forward.1
= control target key start
LH: loop header
LB: loop body
LE: loop exit
PB: predicated region body
PF: predicated region fallthrough
CT: control target
= control target key end

     0   :  { %20 = vsyncpa [#allocation4], 0  ;;  %s2875_s0 = inlined_call_operand.hbm [shape: f32[16,32], index: 0, kind: input, shape index: {}]   ;;  %s2876_s1 = inlined_call_operand.vmem [shape: f32[1,32], index: 1, kind: input, shape index: {}]   ;;  %s2877_s2 = inlined_call_operand.hbm [shape: f32[1,32], index: 2, kind: input, shape index: {}]   ;;  %s2878_s3 = inlined_call_operand.hbm [shape: bf16[32,96], index: 3, kind: input, shape index: {}]   ;;  %s2879_s4 = inlined_call_operand.hbm [shape: f32[1,96], index: 4, kind: input, shape index: {}]   ;;  %s2880_s5 = inlined_call_operand.hbm [shape: bf16[32,32], index: 5, kind: input, shape index: {}]   ;;  %s2881_s6 = inlined_call_operand.hbm [shape: f32[1,32], index: 6, kind: input, shape index: {}]   ;;  %s2882_s7 = inlined_call_operand.hbm [shape: f32[1,32], index: 7, kind: input, shape index: {}]   ;;  %s2883_s8 = inlined_call_operand.hbm [shape: f32[1,32], index: 8, kind: input, shape index: {}]   ;;  %s2884_s9 = inlined_call_operand.hbm [shape: bf16[32,128], index: 9, kind: input, shape index: {}]   ;;  %s2885_s10 = inlined_call_operand.hbm [shape: f32[1,128], index: 10, kind: input, shape index: {}]   ;;  %s2886_s11 = inlined_call_operand.vmem [shape: bf16[128,32], index: 11, kind: input, shape index: {}]   ;;  %s2887_s12 = inlined_call_operand.hbm [shape: f32[1,32], index: 12, kind: input, shape index: {}]   ;;  %s2888_s13 = inlined_call_operand.vmem [shape: bf16[32,768], index: 13, kind: input, shape index: {}]   ;;  %s2889_s14 = inlined_call_operand.vmem [shape: f32[1,768], index: 14, kind: input, shape index: {}]   ;;  %s2890_s15 = inlined_call_operand.hbm [shape: f32[16,768], index: 15, kind: output, shape index: {}]  }
   0x1   :  { %21 = vsyncpa [#allocation7], 0 }
   0x2   :  { %22 = vsyncpa [#allocation10], 0 }
   0x3   :  { %23 = vsyncpa [#allocation13], 0 }
   0x4   :  { %24 = vsyncpa [#allocation16], 0 }
   0x5   :  { %25 = vsyncpa [#allocation19], 0 }
   0x6   :  { %26 = vsyncpa [#allocation5], 0  ;;  %s2420_s18 = smov [#allocation6]   ;;  %s2421_s20 = smov [#allocation9]  }
   0x7   :  { %s47_s19 = sshll.u32 %s2420_s18, 4  ;;  %s69_s21 = sshll.u32 %s2421_s20, 4  ;;  %s48_s19 = int_to_ptr.vmem [resolvable:$true] %s47_s19  ;;  %s70_s21 = int_to_ptr.vmem [resolvable:$true] %s69_s21 }
   0x8   :  { %s2174_s22 = scalar_lea.vmem %s48_s19, 16  ;;  %s2178_s23 = scalar_lea.vmem %s48_s19, 32 }
   0x9   :  { %p2175_p0 = scmp.ne.s32.totalorder %s48_s19, %s2174_s22  ;;  %p2179_p1 = scmp.lt.s32.totalorder %s48_s19, %s48_s19 }
   0xa   :  { %p2180_p2 = scmp.lt.s32.totalorder %s2178_s23, %s2174_s22 }
   0xc   :  { %p2181_p3 = por %p2180_p2, %p2179_p1 }
   0xe   :  { %p2182_p4 = pnand %p2181_p3, %p2175_p0 }
  0x10   :  { %2185 = shalt.err (!%p2182_p4)
}
  0x11   :  { %50 = dma.hbm_to_vmem [thread:$0]  %s2877_s2, 16, %s48_s19, [#allocation7]  }
  0x12   :  { %s2194_s26 = scalar_lea.vmem %s70_s21, 16  ;;  %s2198_s27 = scalar_lea.vmem %s70_s21, 32 }
  0x13   :  { %p2195_p5 = scmp.ne.s32.totalorder %s70_s21, %s2194_s26  ;;  %p2199_p6 = scmp.lt.s32.totalorder %s70_s21, %s70_s21 }
  0x14   :  { %p2200_p7 = scmp.lt.s32.totalorder %s2198_s27, %s2194_s26 }
  0x16   :  { %p2201_p8 = por %p2200_p7, %p2199_p6 }
  0x18   :  { %p2202_p9 = pnand %p2201_p8, %p2195_p5 }
  0x1a   :  { %2205 = shalt.err (!%p2202_p9)
}
  0x1b   :  { %72 = dma.hbm_to_vmem [thread:$0]  %s2879_s4, 16, %s70_s21, [#allocation10]  }
  0x1c   :  { %s2422_s30 = smov [#allocation12]   ;;  %s2423_s17 = smov [#allocation15]  }
  0x1d   :  { %s91_s16 = sshll.u32 %s2422_s30, 4  ;;  %s111_s18 = sshll.u32 %s2423_s17, 4  ;;  %s92_s16 = int_to_ptr.vmem [resolvable:$true] %s91_s16  ;;  %s112_s18 = int_to_ptr.vmem [resolvable:$true] %s111_s18 }
  0x1e   :  { %s2214_s20 = scalar_lea.vmem %s92_s16, 16  ;;  %s2218_s2 = scalar_lea.vmem %s92_s16, 32 }
  0x1f   :  { %p2215_p10 = scmp.ne.s32.totalorder %s92_s16, %s2214_s20  ;;  %p2219_p11 = scmp.lt.s32.totalorder %s92_s16, %s92_s16 }
  0x20   :  { %p2220_p12 = scmp.lt.s32.totalorder %s2218_s2, %s2214_s20 }
  0x22   :  { %p2221_p13 = por %p2220_p12, %p2219_p11 }
  0x24   :  { %p2222_p0 = pnand %p2221_p13, %p2215_p10 }
  0x26   :  { %2225 = shalt.err (!%p2222_p0)
}
  0x27   :  { %94 = dma.hbm_to_vmem [thread:$0]  %s2881_s6, 16, %s92_s16, [#allocation13]  }
  0x28   :  { %s2234_s23 = scalar_lea.vmem %s112_s18, 16  ;;  %s2238_s4 = scalar_lea.vmem %s112_s18, 32 }
  0x29   :  { %p2235_p1 = scmp.ne.s32.totalorder %s112_s18, %s2234_s23  ;;  %p2239_p2 = scmp.lt.s32.totalorder %s112_s18, %s112_s18 }
  0x2a   :  { %p2240_p3 = scmp.lt.s32.totalorder %s2238_s4, %s2234_s23 }
  0x2c   :  { %p2241_p4 = por %p2240_p3, %p2239_p2 }
  0x2e   :  { %p2242_p5 = pnand %p2241_p4, %p2235_p1 }
  0x30   :  { %2245 = shalt.err (!%p2242_p5)
}
  0x31   :  { %114 = dma.hbm_to_vmem [thread:$0]  %s2883_s8, 16, %s112_s18, [#allocation16]  }
  0x32   :  { %s2424_s25 = smov [#allocation18]   ;;  %s2425_s27 = smov [#allocation3]  }
  0x33   :  { %s133_s26 = sshll.u32 %s2424_s25, 4  ;;  %s32_s28 = sshll.u32 %s2425_s27, 4  ;;  %s134_s26 = int_to_ptr.vmem [resolvable:$true] %s133_s26  ;;  %s33_s28 = int_to_ptr.vmem [resolvable:$true] %s32_s28 }
  0x34   :  { %s2254_s29 = scalar_lea.vmem %s134_s26, 16  ;;  %s2258_s6 = scalar_lea.vmem %s134_s26, 32 }
  0x35   :  { %p2255_p6 = scmp.ne.s32.totalorder %s134_s26, %s2254_s29  ;;  %p2259_p7 = scmp.lt.s32.totalorder %s134_s26, %s134_s26 }
  0x36   :  { %p2260_p8 = scmp.lt.s32.totalorder %s2258_s6, %s2254_s29 }
  0x38   :  { %p2261_p9 = por %p2260_p8, %p2259_p7 }
  0x3a   :  { %p2262_p10 = pnand %p2261_p9, %p2255_p6 }
  0x3c   :  { %2265 = shalt.err (!%p2262_p10)
}
  0x3d   :  { %136 = dma.hbm_to_vmem [thread:$0]  %s2885_s10, 16, %s134_s26, [#allocation19]  }
  0x3e   :  { %s2274_s17 = scalar_lea.vmem %s33_s28, 256  ;;  %p2279_p12 = scmp.lt.s32.totalorder %s33_s28, %s33_s28 }
  0x3f   :  { %p2275_p11 = scmp.ne.s32.totalorder %s33_s28, %s2274_s17  ;;  %p2280_p13 = scmp.lt.s32.totalorder %s2274_s17, %s2274_s17 }
  0x41   :  { %p2281_p0 = por %p2280_p13, %p2279_p12 }
  0x43   :  { %p2282_p1 = pnand %p2281_p0, %p2275_p11 }
  0x45   :  { %2285 = shalt.err (!%p2282_p1)
}
  0x46   :  { %s2426_s8 = smov 128   ;;  %s2427_s18 = smov 8  }
  0x47   :  { %38 = dma.hbm_to_vmem [thread:$0]  %s2875_s0, 256, %s33_s28, [#allocation4], %s2426_s8, %s2426_s8, %s2427_s18  }
  0x48   :  { %s2428_s19 = smov [#allocation8]  }
  0x49   :  { %s56_s22 = sshll.u32 %s2428_s19, 4  ;;  %s57_s22 = int_to_ptr.vmem [resolvable:$true] %s56_s22 }
  0x4a   :  { %s2294_s23 = scalar_lea.vmem %s57_s22, 256  ;;  %p2299_p3 = scmp.lt.s32.totalorder %s57_s22, %s57_s22 }
  0x4b   :  { %p2295_p2 = scmp.ne.s32.totalorder %s57_s22, %s2294_s23  ;;  %p2300_p4 = scmp.lt.s32.totalorder %s2294_s23, %s2294_s23 }
  0x4d   :  { %p2301_p5 = por %p2300_p4, %p2299_p3 }
  0x4f   :  { %p2302_p6 = pnand %p2301_p5, %p2295_p2 }
  0x51   :  { %2305 = shalt.err (!%p2302_p6)
}
  0x52   :  { %s2429_s10 = smov 64   ;;  %s2430_s4 = smov 4  }
  0x53   :  { %62 = dma.hbm_to_vmem [thread:$0]  %s2878_s3, 256, %s57_s22, [#allocation7], %s2429_s10, %s2429_s10, %s2430_s4  }
  0x54   :  { %s2431_s0 = smov [#allocation11]   ;;  %s2432_s26 = smov [#allocation14]  }
  0x55   :  { %s78_s25 = sshll.u32 %s2431_s0, 4  ;;  %s101_s27 = sshll.u32 %s2432_s26, 4  ;;  %s79_s25 = int_to_ptr.vmem [resolvable:$true] %s78_s25  ;;  %s102_s27 = int_to_ptr.vmem [resolvable:$true] %s101_s27 }
  0x56   :  { %s2314_s28 = scalar_lea.vmem %s79_s25, 256  ;;  %p2319_p8 = scmp.lt.s32.totalorder %s79_s25, %s79_s25 }
  0x57   :  { %p2315_p7 = scmp.ne.s32.totalorder %s79_s25, %s2314_s28  ;;  %p2320_p9 = scmp.lt.s32.totalorder %s2314_s28, %s2314_s28 }
  0x59   :  { %p2321_p10 = por %p2320_p9, %p2319_p8 }
  0x5b   :  { %p2322_p11 = pnand %p2321_p10, %p2315_p7 }
  0x5d   :  { %2325 = shalt.err (!%p2322_p11)
}
  0x5e   :  { %84 = dma.hbm_to_vmem [thread:$0]  %s2880_s5, 256, %s79_s25, [#allocation10], %s2429_s10, %s2429_s10, %s2430_s4  }
  0x5f   :  { %s2334_s3 = scalar_lea.vmem %s102_s27, 16  ;;  %s2338_s30 = scalar_lea.vmem %s102_s27, 32 }
  0x60   :  { %p2335_p12 = scmp.ne.s32.totalorder %s102_s27, %s2334_s3  ;;  %p2339_p13 = scmp.lt.s32.totalorder %s102_s27, %s102_s27 }
  0x61   :  { %p2340_p0 = scmp.lt.s32.totalorder %s2338_s30, %s2334_s3 }
  0x63   :  { %p2341_p1 = por %p2340_p0, %p2339_p13 }
  0x65   :  { %p2342_p2 = pnand %p2341_p1, %p2335_p12 }
  0x67   :  { %2345 = shalt.err (!%p2342_p2)
}
  0x68   :  { %104 = dma.hbm_to_vmem [thread:$0]  %s2882_s7, 16, %s102_s27, [#allocation13]  }
  0x69   :  { %s2433_s8 = smov [#allocation17]   ;;  %s2434_s2 = smov [#allocation20]  }
  0x6a   :  { %s120_s20 = sshll.u32 %s2433_s8, 4  ;;  %s145_s19 = sshll.u32 %s2434_s2, 4  ;;  %s121_s20 = int_to_ptr.vmem [resolvable:$true] %s120_s20  ;;  %s146_s19 = int_to_ptr.vmem [resolvable:$true] %s145_s19 }
  0x6b   :  { %s2354_s22 = scalar_lea.vmem %s121_s20, 256  ;;  %p2359_p4 = scmp.lt.s32.totalorder %s121_s20, %s121_s20 }
  0x6c   :  { %p2355_p3 = scmp.ne.s32.totalorder %s121_s20, %s2354_s22  ;;  %p2360_p5 = scmp.lt.s32.totalorder %s2354_s22, %s2354_s22 }
  0x6e   :  { %p2361_p6 = por %p2360_p5, %p2359_p4 }
  0x70   :  { %p2362_p7 = pnand %p2361_p6, %p2355_p3 }
  0x72   :  { %2365 = shalt.err (!%p2362_p7)
}
  0x73   :  { %126 = dma.hbm_to_vmem [thread:$0]  %s2884_s9, 256, %s121_s20, [#allocation16], %s2429_s10, %s2429_s10, %s2430_s4  }
  0x74   :  { %s2374_s7 = scalar_lea.vmem %s146_s19, 16  ;;  %s2378_s21 = scalar_lea.vmem %s146_s19, 32 }
  0x75   :  { %p2375_p8 = scmp.ne.s32.totalorder %s146_s19, %s2374_s7  ;;  %p2379_p9 = scmp.lt.s32.totalorder %s146_s19, %s146_s19 }
  0x76   :  { %p2380_p10 = scmp.lt.s32.totalorder %s2378_s21, %s2374_s7 }
  0x78   :  { %p2381_p11 = por %p2380_p10, %p2379_p9 }
  0x7a   :  { %p2382_p12 = pnand %p2381_p11, %p2375_p8 }
  0x7c   :  { %2385 = shalt.err (!%p2382_p12)
}
  0x7d   :  { %148 = dma.hbm_to_vmem [thread:$0]  %s2887_s12, 16, %s146_s19, [#allocation19]  }
  0x7e   :  { %2406 = dma.done.wait [#allocation4], 256  }
  0x7f   :  { %2407 = vsyncadd [#allocation4], 4294967040 }
  0x80   :  { %2408 = dma.done.wait [#allocation7], 272  }
  0x81   :  { %2409 = vsyncadd [#allocation7], 4294967024 }
  0x82   :  { %2410 = dma.done.wait [#allocation10], 272  }
  0x83   :  { %2411 = vsyncadd [#allocation10], 4294967024 }
  0x84   :  { %2412 = dma.done.wait [#allocation13], 32  }
  0x85   :  { %2413 = vsyncadd [#allocation13], 4294967264 }
  0x86   :  { %2414 = dma.done.wait [#allocation16], 272  }
  0x87   :  { %2415 = vsyncadd [#allocation16], 4294967024 }
  0x88   :  { %2416 = dma.done.wait [#allocation19], 32  }
  0x89   :  { %2417 = vsyncadd [#allocation19], 4294967264  ;;  %vm189_vm0 = vcmask 261120   ;;  %v2575_v0 = vld [vmem:[#allocation3] sm:$0xff]  ;;  %v2577_v1 = vld [vmem:[#allocation3 + $0x8] sm:$0xff]  ;;  %v2435_v15 = vmov 0.0  }
  0x8a   :  { %v190_v2 = vsel %vm189_vm0, %v2575_v0, 0.0  ;;  %v193_v3 = vsel %vm189_vm0, %v2577_v1, 0.0  ;;  %v2086_v14 = vld [vmem:[#allocation8 + $0x8] sm:$0xff]   ;;  %1914 = vmatprep.subr.bf16.mxu0 %v2435_v15  ;;  %vm2436_vm1 = vmmov 0   ;;  %v2087_v16 = vld [vmem:[#allocation8] sm:$0xff]   ;;  %1922 = vmatprep.subr.bf16.mxu1 %v2435_v15  ;;  %s2438_s4 = smov 96  }
  0x8b   :  { %191 = vadd.xlane.f32.xlu0 %v190_v2  ;;  %1918 = vmatprep.mubr.msk.bf16.mxu0 %vm2436_vm1, %v2435_v15  ;;  %v1806_v25 = vld [vmem:[%s2876_s1] ss:$0 sm:$0xff]  ;;  %v1808_v34 = vld [vmem:[#allocation9] ss:$0 sm:$0xff]  ;;  %s2437_s1 = smov 88   ;;  %s2439_s25 = smov 120  }
  0x8c   :  { %1915 = vmatpush3.bf16.msra.mxu0 %v2086_v14  ;;  %1924 = vmatprep.mubr.msk.bf16.mxu1 %vm2436_vm1, %v2435_v15  ;;  %v1807_v29 = vld [vmem:[#allocation6] ss:$0 sm:$0xff]  ;;  %s2440_s26 = smov 112   ;;  %s2441_s27 = smov 80   ;;  %vm307_vm2 = vcmask 64512   ;;  %vm371_vm3 = vcmask 1043456  }
  0x8d   :  { %1916 = vmatprep.subr.bf16.mxu0 %v2435_v15  ;;  %s2442_s28 = smov 104   ;;  %s2443_s29 = smov 72   ;;  %vm530_vm4 = vcmask 130112   ;;  %vm646_vm5 = vcmask 195712   ;;  %vm762_vm6 = vcmask 261312  }
  0x8e   :  { %s2444_s6 = smov 56   ;;  %s2445_s3 = smov 48  }
  0x8f   :  { %194 = vadd.xlane.f32.xlu0 %v193_v3  ;;  %s2447_s30 = smov 16   ;;  %s2448_s16 = smov 24  }
  0x90   :  { %1917 = vmatpush3.bf16.msra.mxu0 %v2087_v16 }
  0x91   :  { %1928 = vmatprep.subr.bf16.mxu0 %v2435_v15 }
 0x114   :  { %v192_v4 = vpop.xlane.xlu0 %191 }
 0x115   :  { %v197_v5 = vmul.f32 0.03125, %v192_v4 }
 0x117   :  { %v199_v6 = vsub.f32 %v2575_v0, %v197_v5 }
 0x118   :  { %v195_v7 = vpop.xlane.xlu0 %194 }
 0x119   :  { %v198_v8 = vmul.f32 0.03125, %v195_v7  ;;  %v201_v9 = vmul.f32 %v199_v6, %v199_v6 }
 0x11b   :  { %v200_v10 = vsub.f32 %v2577_v1, %v198_v8  ;;  %v203_v11 = vsel %vm189_vm0, %v201_v9, 0.0 }
 0x11c   :  { %204 = vadd.xlane.f32.xlu1 %v203_v11 }
 0x11d   :  { %v202_v12 = vmul.f32 %v200_v10, %v200_v10 }
 0x11f   :  { %v206_v13 = vsel %vm189_vm0, %v202_v12, 0.0 }
 0x120   :  { %207 = vadd.xlane.f32.xlu1 %v206_v13 }
 0x1a5   :  { %v205_v17 = vpop.xlane.xlu1 %204 }
 0x1a6   :  { %v209_v18 = vmul.f32 0.03125, %v205_v17 }
 0x1a8   :  { %v211_v19 = vadd.f32 1e-05, %v209_v18 }
 0x1a9   :  { %v208_v20 = vpop.xlane.xlu1 %207 }
 0x1aa   :  { %2118 = vrsqrt.f32 %v211_v19  ;;  %v210_v21 = vmul.f32 0.03125, %v208_v20 }
 0x1ac   :  { %v212_v22 = vadd.f32 1e-05, %v210_v21 }
 0x1ae   :  { %2120 = vrsqrt.f32 %v212_v22 }
 0x1b7   :  { %v2119_v23 = vpop.eup %2118 }
 0x1b8   :  { %v215_v24 = vmul.f32 %v2119_v23, %v199_v6 }
 0x1ba   :  { %v224_v28 = vmul.f32 %v1806_v25, %v215_v24 }
 0x1bb   :  { %v2121_v26 = vpop.eup %2120 }
 0x1bc   :  { %v216_v27 = vmul.f32 %v2121_v26, %v200_v10  ;;  %v233_v31 = vadd.f32 %v1807_v29, %v224_v28 }
 0x1be   :  { %v225_v30 = vmul.f32 %v1806_v25, %v216_v27 }
 0x1c0   :  { %v234_v32 = vadd.f32 %v1807_v29, %v225_v30 }
 0x1c2   :  { %v235_v33 = vpack.c.bf16 %v234_v32, %v233_v31 }
 0x1c4   :  { %1919 = vmatmul.mubr.msk.bf16.vlgmr.msra.gmra.mxu0 %vm189_vm0, %v235_v33 }
 0x1c5   :  { %1930 = vmatprep.mubr.msk.bf16.mxu0 %vm2436_vm1, %v2435_v15 }
 0x284   :  { %v296_v35 = vpop.f32.mrf.mxu0 }
 0x285   :  { %v297_v36 = vadd.f32 %v1808_v34, %v296_v35 }
 0x286   :  { %v1920_v37 = vpop.f32.mrf.mxu0 }
 0x287   :  { %v2601_v38 = vpack.c.bf16 %v297_v36, %v297_v36 }
 0x288   :  { %v299_v39 = vpop.f32.mrf.mxu0 }
 0x289   :  { %418 = vrot.lane.b32.xlu1 %v2601_v38, %s2437_s1  ;;  %305 = vrot.lane.b32.xlu0 %v2601_v38, %s2438_s4  ;;  %v300_v41 = vadd.f32 %v1808_v34, %v299_v39 }
 0x28a   :  { %v1921_v40 = vpop.f32.mrf.mxu0 }
 0x28b   :  { %v2609_v42 = vpack.c.bf16 %v300_v41, %v300_v41 }
 0x28d   :  { %416 = vrot.lane.b32.xlu1 %v2601_v38, %s2439_s25  ;;  %532 = vrot.lane.b32.xlu0 %v2601_v38, %s2440_s26 }
 0x291   :  { %534 = vrot.lane.b32.xlu1 %v2601_v38, %s2441_s27  ;;  %648 = vrot.lane.b32.xlu0 %v2601_v38, %s2442_s28 }
 0x295   :  { %650 = vrot.lane.b32.xlu1 %v2601_v38, %s2443_s29  ;;  %877 = vrot.lane.b32.xlu0 %v2609_v42, %s2437_s1 }
 0x299   :  { %992 = vrot.lane.b32.xlu0 %v2609_v42, %s2441_s27  ;;  %766 = vrot.lane.b32.xlu1 %v2609_v42, %s2438_s4 }
 0x29d   :  { %1107 = vrot.lane.b32.xlu0 %v2609_v42, %s2443_s29  ;;  %875 = vrot.lane.b32.xlu1 %v2609_v42, %s2439_s25 }
 0x2a1   :  { %990 = vrot.lane.b32.xlu1 %v2609_v42, %s2440_s26 }
 0x2a5   :  { %1105 = vrot.lane.b32.xlu1 %v2609_v42, %s2442_s28 }
 0x2fb   :  { %v306_v43 = vpop.permute.xlu0 %305  ;;  %v419_v45 = vpop.permute.xlu1 %418 }
 0x2fc   :  { %v312_v44 = vsel %vm307_vm2, %v306_v43, 0  ;;  %v424_v47 = vsel %vm307_vm2, %v419_v45, 0 }
 0x2fd   :  { %1923 = vmatpush3.bf16.xpose.msra.mxu1 %v312_v44 }
 0x2fe   :  { %1934 = vmatprep.subr.bf16.mxu1 %v2435_v15 }
 0x2ff   :  { %v417_v46 = vpop.permute.xlu1 %416  ;;  %v533_v51 = vpop.permute.xlu0 %532 }
 0x303   :  { %v535_v48 = vpop.permute.xlu1 %534  ;;  %v649_v54 = vpop.permute.xlu0 %648 }
 0x304   :  { %1925 = vmatmul.mubr.msk.bf16.vlgmr.msra.gmra.mxu1 %vm307_vm2, %v2601_v38  ;;  %v540_v49 = vsel %vm307_vm2, %v535_v48, 0 }
 0x305   :  { %1935 = vmatpush3.bf16.xpose.msra.mxu1 %v424_v47  ;;  %1936 = vmatprep.mubr.msk.bf16.mxu1 %vm2436_vm1, %v2435_v15 }
 0x306   :  { %1946 = vmatprep.subr.bf16.mxu1 %v2435_v15 }
 0x307   :  { %v651_v50 = vpop.permute.xlu1 %650  ;;  %v878_v56 = vpop.permute.xlu0 %877 }
 0x308   :  { %v656_v52 = vsel %vm307_vm2, %v651_v50, 0  ;;  %v883_v57 = vsel %vm307_vm2, %v878_v56, 0 }
 0x30b   :  { %v767_v53 = vpop.permute.xlu1 %766  ;;  %v993_v58 = vpop.permute.xlu0 %992 }
 0x30c   :  { %1937 = vmatmul.mubr.msk.bf16.vlgmr.msra.gmra.mxu1 %vm307_vm2, %v417_v46  ;;  %v772_v55 = vsel %vm307_vm2, %v767_v53, 0  ;;  %v998_v60 = vsel %vm307_vm2, %v993_v58, 0 }
 0x30d   :  { %1947 = vmatpush3.bf16.xpose.msra.mxu1 %v540_v49  ;;  %1948 = vmatprep.mubr.msk.bf16.mxu1 %vm2436_vm1, %v2435_v15 }
 0x30e   :  { %1958 = vmatprep.subr.bf16.mxu1 %v2435_v15 }
 0x30f   :  { %v876_v59 = vpop.permute.xlu1 %875  ;;  %v1108_v61 = vpop.permute.xlu0 %1107 }
 0x310   :  { %v1113_v63 = vsel %vm307_vm2, %v1108_v61, 0 }
 0x313   :  { %v991_v62 = vpop.permute.xlu1 %990 }
 0x314   :  { %1949 = vmatmul.mubr.msk.bf16.vlgmr.msra.gmra.mxu1 %vm307_vm2, %v533_v51 }
 0x315   :  { %1959 = vmatpush3.bf16.xpose.msra.mxu1 %v656_v52  ;;  %1960 = vmatprep.mubr.msk.bf16.mxu1 %vm2436_vm1, %v2435_v15 }
 0x316   :  { %1970 = vmatprep.subr.bf16.mxu1 %v2435_v15 }
 0x317   :  { %v1106_v2 = vpop.permute.xlu1 %1105 }
 0x31c   :  { %1961 = vmatmul.mubr.msk.bf16.vlgmr.msra.gmra.mxu1 %vm307_vm2, %v649_v54 }
 0x31d   :  { %1971 = vmatpush3.bf16.xpose.msra.mxu1 %v772_v55  ;;  %1972 = vmatprep.mubr.msk.bf16.mxu1 %vm2436_vm1, %v2435_v15 }
 0x31e   :  { %1982 = vmatprep.subr.bf16.mxu1 %v2435_v15 }
 0x324   :  { %1973 = vmatmul.mubr.msk.bf16.vlgmr.msra.gmra.mxu1 %vm307_vm2, %v2609_v42 }
 0x325   :  { %1983 = vmatpush3.bf16.xpose.msra.mxu1 %v883_v57  ;;  %1984 = vmatprep.mubr.msk.bf16.mxu1 %vm2436_vm1, %v2435_v15 }
 0x326   :  { %1994 = vmatprep.subr.bf16.mxu1 %v2435_v15 }
 0x32c   :  { %1985 = vmatmul.mubr.msk.bf16.vlgmr.msra.gmra.mxu1 %vm307_vm2, %v876_v59 }
 0x32d   :  { %1995 = vmatpush3.bf16.xpose.msra.mxu1 %v998_v60  ;;  %1996 = vmatprep.mubr.msk.bf16.mxu1 %vm2436_vm1, %v2435_v15 }
 0x32e   :  { %2006 = vmatprep.subr.bf16.mxu1 %v2435_v15 }
 0x334   :  { %1997 = vmatmul.mubr.msk.bf16.vlgmr.msra.gmra.mxu1 %vm307_vm2, %v991_v62 }
 0x335   :  { %2007 = vmatpush3.bf16.xpose.msra.mxu1 %v1113_v63  ;;  %2008 = vmatprep.mubr.msk.bf16.mxu1 %vm2436_vm1, %v2435_v15 }
 0x336   :  { %2018 = vmatprep.subr.bf16.mxu1 %v2435_v15 }
 0x33c   :  { %2009 = vmatmul.mubr.msk.bf16.vlgmr.msra.gmra.mxu1 %vm307_vm2, %v1106_v2 }
 0x33d   :  { %2022 = vmatprep.mubr.msk.bf16.mxu1 %vm2436_vm1, %v2435_v15 }
 0x3c4   :  { %v348_v3 = vpop.f32.mrf.mxu1 }
 0x3c5   :  { %v354_v4 = vsel %vm307_vm2, %v348_v3, -inf }
 0x3c6   :  { %v1926_v5 = vpop.f32.mrf.mxu1  ;;  %355 = vmax.xlane.f32.xlu0 %v354_v4 }
 0x3c8   :  { %v351_v6 = vpop.f32.mrf.mxu1 }
 0x3ca   :  { %v1927_v7 = vpop.f32.mrf.mxu1 }
 0x3cc   :  { %v460_v8 = vpop.f32.mrf.mxu1 }
 0x3cd   :  { %v466_v9 = vsel %vm307_vm2, %v460_v8, -inf }
 0x3ce   :  { %v1938_v10 = vpop.f32.mrf.mxu1  ;;  %467 = vmax.xlane.f32.xlu1 %v466_v9 }
 0x3d0   :  { %v463_v11 = vpop.f32.mrf.mxu1 }
 0x3d2   :  { %v1939_v12 = vpop.f32.mrf.mxu1 }
 0x3d4   :  { %v2663_v13 = vpop.f32.mrf.mxu1 }
 0x3d5   :  { %v582_v34 = vsel %vm307_vm2, %v2663_v13, -inf }
 0x3d6   :  { %v1950_v14 = vpop.f32.mrf.mxu1 }
 0x3d8   :  { %v579_v16 = vpop.f32.mrf.mxu1 }
 0x3da   :  { %v1951_v17 = vpop.f32.mrf.mxu1 }
 0x3dc   :  { %v2665_v18 = vpop.f32.mrf.mxu1  ;;  %366 = vrot.lane.b32.xlu0 %v2601_v38, %s2429_s10 }
 0x3dd   :  { %v698_v37 = vsel %vm307_vm2, %v2665_v18, -inf }
 0x3de   :  { %v1962_v19 = vpop.f32.mrf.mxu1 }
 0x3df   :  { %478 = vrot.lane.b32.xlu1 %v2601_v38, %s2444_s6 }
 0x3e0   :  { %v695_v20 = vpop.f32.mrf.mxu1 }
 0x3e2   :  { %v1963_v21 = vpop.f32.mrf.mxu1 }
 0x3e4   :  { %v808_v22 = vpop.f32.mrf.mxu1 }
 0x3e5   :  { %v814_v41 = vsel %vm307_vm2, %v808_v22, -inf }
 0x3e6   :  { %v1974_v23 = vpop.f32.mrf.mxu1 }
 0x3e8   :  { %v811_v24 = vpop.f32.mrf.mxu1 }
 0x3ea   :  { %v1975_v25 = vpop.f32.mrf.mxu1 }
 0x3ec   :  { %v919_v26 = vpop.f32.mrf.mxu1 }
 0x3ed   :  { %v925_v43 = vsel %vm307_vm2, %v919_v26, -inf }
 0x3ee   :  { %v1986_v27 = vpop.f32.mrf.mxu1 }
 0x3f0   :  { %v922_v28 = vpop.f32.mrf.mxu1 }
 0x3f2   :  { %v1987_v29 = vpop.f32.mrf.mxu1 }
 0x3f4   :  { %v2671_v30 = vpop.f32.mrf.mxu1 }
 0x3f5   :  { %v1040_v44 = vsel %vm307_vm2, %v2671_v30, -inf }
 0x3f6   :  { %v1998_v31 = vpop.f32.mrf.mxu1 }
 0x3f8   :  { %v1037_v32 = vpop.f32.mrf.mxu1 }
 0x3fa   :  { %v1999_v33 = vpop.f32.mrf.mxu1 }
 0x3fb   :  { %583 = vmax.xlane.f32.xlu0 %v582_v34 }
 0x3fc   :  { %v2675_v35 = vpop.f32.mrf.mxu1 }
 0x3fd   :  { %v1155_v45 = vsel %vm307_vm2, %v2675_v35, -inf }
 0x3fe   :  { %v2010_v36 = vpop.f32.mrf.mxu1 }
 0x3ff   :  { %699 = vmax.xlane.f32.xlu0 %v698_v37 }
 0x400   :  { %v1152_v39 = vpop.f32.mrf.mxu1 }
 0x402   :  { %v2011_v40 = vpop.f32.mrf.mxu1 }
 0x403   :  { %815 = vmax.xlane.f32.xlu0 %v814_v41  ;;  %926 = vmax.xlane.f32.xlu1 %v925_v43 }
 0x407   :  { %1041 = vmax.xlane.f32.xlu0 %v1040_v44  ;;  %1156 = vmax.xlane.f32.xlu1 %v1155_v45 }
 0x41d   :  { %594 = vrot.lane.b32.xlu0 %v2601_v38, %s2445_s3 }
 0x44f   :  { %v356_v46 = vpop.xlane.xlu0 %355 }
 0x450   :  { %v357_v47 = vsub.f32 %v348_v3, %v356_v46 }
 0x452   :  { %v358_v48 = vmul.f32 1.442695, %v357_v47 }
 0x453   :  { %v367_v49 = vpop.permute.xlu0 %366 }
 0x454   :  { %2122 = vpow2.f32 %v358_v48  ;;  %v373_v50 = vsel %vm371_vm3, %v367_v49, 0 }
 0x455   :  { %1929 = vmatpush3.bf16.msra.mxu0 %v373_v50 }
 0x456   :  { %1940 = vmatprep.subr.bf16.mxu0 %v2435_v15 }
 0x457   :  { %v468_v51 = vpop.xlane.xlu1 %467 }
 0x458   :  { %v469_v52 = vsub.f32 %v460_v8, %v468_v51 }
 0x45a   :  { %v470_v53 = vmul.f32 1.442695, %v469_v52 }
 0x45b   :  { %v479_v61 = vpop.permute.xlu1 %478 }
 0x45c   :  { %2124 = vpow2.f32 %v470_v53  ;;  %v484_v33 = vsel %vm371_vm3, %v479_v61, 0 }
 0x461   :  { %v2123_v54 = vpop.eup %2122 }
 0x462   :  { %v360_v55 = vsel %vm307_vm2, %v2123_v54, 0.0 }
 0x463   :  { %361 = vadd.xlane.f32.xlu0 %v360_v55 }
 0x469   :  { %v2690_v56 = vpop.eup %2124 }
 0x46a   :  { %v472_v57 = vsel %vm307_vm2, %v2690_v56, 0.0 }
 0x46b   :  { %473 = vadd.xlane.f32.xlu1 %v472_v57 }
 0x47c   :  { %826 = vrot.lane.b32.xlu1 %v2609_v42, %s2429_s10  ;;  %s2446_s10 = smov 40  }
 0x484   :  { %v584_v58 = vpop.xlane.xlu0 %583 }
 0x485   :  { %v585_v59 = vsub.f32 %v2663_v13, %v584_v58 }
 0x487   :  { %v586_v60 = vmul.f32 1.442695, %v585_v59 }
 0x488   :  { %v700_v62 = vpop.xlane.xlu0 %699 }
 0x489   :  { %2126 = vpow2.f32 %v586_v60  ;;  %v701_v63 = vsub.f32 %v2665_v18, %v700_v62 }
 0x48b   :  { %v702_v2 = vmul.f32 1.442695, %v701_v63 }
 0x48c   :  { %v816_v3 = vpop.xlane.xlu0 %815  ;;  %v927_v4 = vpop.xlane.xlu1 %926 }
 0x48d   :  { %v817_v5 = vsub.f32 %v808_v22, %v816_v3  ;;  %2128 = vpow2.f32 %v702_v2  ;;  %v928_v7 = vsub.f32 %v919_v26, %v927_v4 }
 0x48f   :  { %v818_v6 = vmul.f32 1.442695, %v817_v5  ;;  %v929_v8 = vmul.f32 1.442695, %v928_v7 }
 0x490   :  { %v1042_v18 = vpop.xlane.xlu0 %1041  ;;  %v1157_v21 = vpop.xlane.xlu1 %1156 }
 0x491   :  { %2130 = vpow2.f32 %v818_v6  ;;  %v1043_v19 = vsub.f32 %v2671_v30, %v1042_v18  ;;  %v1158_v22 = vsub.f32 %v2675_v35, %v1157_v21 }
 0x492   :  { %2132 = vpow2.f32 %v929_v8 }
 0x493   :  { %v1044_v20 = vmul.f32 1.442695, %v1043_v19  ;;  %v1159_v23 = vmul.f32 1.442695, %v1158_v22 }
 0x494   :  { %v595_v27 = vpop.permute.xlu0 %594 }
 0x495   :  { %2134 = vpow2.f32 %v1044_v20 }
 0x496   :  { %v2127_v9 = vpop.eup %2126  ;;  %2136 = vpow2.f32 %v1159_v23 }
 0x497   :  { %v588_v10 = vsel %vm307_vm2, %v2127_v9, 0.0 }
 0x498   :  { %589 = vadd.xlane.f32.xlu0 %v588_v10 }
 0x49a   :  { %v2699_v11 = vpop.eup %2128 }
 0x49b   :  { %v704_v12 = vsel %vm307_vm2, %v2699_v11, 0.0 }
 0x49e   :  { %v2703_v13 = vpop.eup %2130 }
 0x49f   :  { %v820_v14 = vsel %vm307_vm2, %v2703_v13, 0.0  ;;  %v2707_v16 = vpop.eup %2132 }
 0x4a0   :  { %705 = vadd.xlane.f32.xlu1 %v704_v12  ;;  %v931_v17 = vsel %vm307_vm2, %v2707_v16, 0.0 }
 0x4a2   :  { %v2716_v24 = vpop.eup %2134 }
 0x4a3   :  { %v1046_v25 = vsel %vm307_vm2, %v2716_v24, 0.0 }
 0x4a4   :  { %821 = vadd.xlane.f32.xlu1 %v820_v14 }
 0x4a8   :  { %932 = vadd.xlane.f32.xlu1 %v931_v17 }
 0x4ae   :  { %710 = vrot.lane.b32.xlu0 %v2601_v38, %s2446_s10  ;;  %v2720_v38 = vpop.eup %2136 }
 0x4af   :  { %v1161_v26 = vsel %vm307_vm2, %v2720_v38, 0.0 }
 0x4b9   :  { %937 = vrot.lane.b32.xlu1 %v2609_v42, %s2444_s6 }
 0x4cd   :  { %1047 = vadd.xlane.f32.xlu0 %v1046_v25 }
 0x4dd   :  { %1162 = vadd.xlane.f32.xlu1 %v1161_v26 }
 0x4e3   :  { %1052 = vrot.lane.b32.xlu0 %v2609_v42, %s2445_s3 }
 0x4ec   :  { %v362_v28 = vpop.xlane.xlu0 %361 }
 0x4ed   :  { %2138 = vrcp.f32 %v362_v28 }
 0x4ee   :  { %1167 = vrot.lane.b32.xlu1 %v2609_v42, %s2446_s10  ;;  %v600_v42 = vsel %vm371_vm3, %v595_v27, 0 }
 0x4f4   :  { %v474_v29 = vpop.xlane.xlu1 %473 }
 0x4f5   :  { %2140 = vrcp.f32 %v474_v29 }
 0x4f8   :  { %v827_v39 = vpop.permute.xlu1 %826 }
 0x4f9   :  { %v832_v53 = vsel %vm371_vm3, %v827_v39, 0 }
 0x4fa   :  { %v2139_v30 = vpop.eup %2138 }
 0x4fb   :  { %v364_v31 = vmul.f32 %v2139_v30, %v2123_v54 }
 0x4fd   :  { %v365_v32 = vpack.c.bf16 %v364_v31, %v364_v31 }
 0x4ff   :  { %1931 = vmatmul.mubr.msk.bf16.vlgmr.msra.gmra.mxu0 %vm307_vm2, %v365_v32 }
 0x500   :  { %1941 = vmatpush3.bf16.msra.mxu0 %v484_v33  ;;  %1942 = vmatprep.mubr.msk.bf16.mxu0 %vm2436_vm1, %v2435_v15 }
 0x501   :  { %1952 = vmatprep.subr.bf16.mxu0 %v2435_v15 }
 0x502   :  { %v2141_v34 = vpop.eup %2140 }
 0x503   :  { %v476_v35 = vmul.f32 %v2141_v34, %v2690_v56 }
 0x505   :  { %v477_v36 = vpack.c.bf16 %v476_v35, %v476_v35 }
 0x507   :  { %1943 = vmatmul.mubr.msk.bf16.vlgmr.msra.gmra.mxu0 %vm307_vm2, %v477_v36 }
 0x508   :  { %1953 = vmatpush3.bf16.msra.mxu0 %v600_v42  ;;  %1954 = vmatprep.mubr.msk.bf16.mxu0 %vm2436_vm1, %v2435_v15 }
 0x509   :  { %1964 = vmatprep.subr.bf16.mxu0 %v2435_v15 }
 0x521   :  { %v590_v37 = vpop.xlane.xlu0 %589 }
 0x522   :  { %2142 = vrcp.f32 %v590_v37  ;;  %v2088_v37 = vld [vmem:[#allocation11 + $0x8] sm:$0xff]  }
 0x523   :  { %2019 = vmatpush3.bf16.msra.mxu1 %v2088_v37  ;;  %v2099_v37 = vld [vmem:[%s2886_s11] sm:$0xff]  }
 0x524   :  { %2020 = vmatprep.subr.bf16.mxu1 %v2435_v15 }
 0x525   :  { %v711_v45 = vpop.permute.xlu0 %710 }
 0x526   :  { %v716_v48 = vsel %vm371_vm3, %v711_v45, 0 }
 0x529   :  { %v706_v40 = vpop.xlane.xlu1 %705 }
 0x52a   :  { %2144 = vrcp.f32 %v706_v40  ;;  %v2089_v40 = vld [vmem:[#allocation11] sm:$0xff]  }
 0x52b   :  { %2021 = vmatpush3.bf16.msra.mxu1 %v2089_v40 }
 0x52c   :  { %2034 = vmatprep.subr.bf16.mxu1 %v2435_v15 }
 0x52d   :  { %v822_v41 = vpop.xlane.xlu1 %821 }
 0x52e   :  { %2146 = vrcp.f32 %v822_v41 }
 0x52f   :  { %v2143_v43 = vpop.eup %2142 }
 0x530   :  { %v592_v44 = vmul.f32 %v2143_v43, %v2127_v9 }
 0x531   :  { %v933_v47 = vpop.xlane.xlu1 %932 }
 0x532   :  { %v593_v46 = vpack.c.bf16 %v592_v44, %v592_v44  ;;  %2148 = vrcp.f32 %v933_v47 }
 0x534   :  { %1955 = vmatmul.mubr.msk.bf16.vlgmr.msra.gmra.mxu0 %vm307_vm2, %v593_v46 }
 0x535   :  { %1965 = vmatpush3.bf16.msra.mxu0 %v716_v48  ;;  %1966 = vmatprep.mubr.msk.bf16.mxu0 %vm2436_vm1, %v2435_v15  ;;  %v938_v55 = vpop.permute.xlu1 %937 }
 0x536   :  { %1976 = vmatprep.subr.bf16.mxu0 %v2435_v15  ;;  %v943_v58 = vsel %vm371_vm3, %v938_v55, 0  ;;  %v1828_v55 = vld [vmem:[#allocation12] ss:$0 sm:$0xff] }
 0x537   :  { %v2145_v49 = vpop.eup %2144 }
 0x538   :  { %v708_v50 = vmul.f32 %v2145_v49, %v2699_v11 }
 0x53a   :  { %v709_v51 = vpack.c.bf16 %v708_v50, %v708_v50 }
 0x53b   :  { %v2147_v52 = vpop.eup %2146 }
 0x53c   :  { %1967 = vmatmul.mubr.msk.bf16.vlgmr.msra.gmra.mxu0 %vm307_vm2, %v709_v51  ;;  %v824_v54 = vmul.f32 %v2147_v52, %v2703_v13 }
 0x53d   :  { %1977 = vmatpush3.bf16.msra.mxu0 %v832_v53  ;;  %1978 = vmatprep.mubr.msk.bf16.mxu0 %vm2436_vm1, %v2435_v15 }
 0x53e   :  { %1988 = vmatprep.subr.bf16.mxu0 %v2435_v15  ;;  %v825_v56 = vpack.c.bf16 %v824_v54, %v824_v54 }
 0x53f   :  { %v2149_v57 = vpop.eup %2148 }
 0x540   :  { %v935_v59 = vmul.f32 %v2149_v57, %v2707_v16 }
 0x542   :  { %v936_v60 = vpack.c.bf16 %v935_v59, %v935_v59 }
 0x544   :  { %1979 = vmatmul.mubr.msk.bf16.vlgmr.msra.gmra.mxu0 %vm307_vm2, %v825_v56 }
 0x545   :  { %1989 = vmatpush3.bf16.msra.mxu0 %v943_v58  ;;  %1990 = vmatprep.mubr.msk.bf16.mxu0 %vm2436_vm1, %v2435_v15 }
 0x546   :  { %2000 = vmatprep.subr.bf16.mxu0 %v2435_v15 }
 0x54c   :  { %1991 = vmatmul.mubr.msk.bf16.vlgmr.msra.gmra.mxu0 %vm307_vm2, %v936_v60 }
 0x54d   :  { %2002 = vmatprep.mubr.msk.bf16.mxu0 %vm2436_vm1, %v2435_v15 }
 0x556   :  { %v1048_v61 = vpop.xlane.xlu0 %1047 }
 0x557   :  { %2150 = vrcp.f32 %v1048_v61 }
 0x55a   :  { %v1053_v62 = vpop.permute.xlu0 %1052 }
 0x55b   :  { %v1058_v63 = vsel %vm371_vm3, %v1053_v62, 0 }
 0x55c   :  { %2001 = vmatpush3.bf16.msra.mxu0 %v1058_v63 }
 0x55d   :  { %2012 = vmatprep.subr.bf16.mxu0 %v2435_v15 }
 0x564   :  { %v2151_v2 = vpop.eup %2150 }
 0x565   :  { %v1050_v3 = vmul.f32 %v2151_v2, %v2716_v24 }
 0x566   :  { %v1163_v4 = vpop.xlane.xlu1 %1162 }
 0x567   :  { %2152 = vrcp.f32 %v1163_v4  ;;  %v1051_v5 = vpack.c.bf16 %v1050_v3, %v1050_v3 }
 0x569   :  { %2003 = vmatmul.mubr.msk.bf16.vlgmr.msra.gmra.mxu0 %vm307_vm2, %v1051_v5 }
 0x56a   :  { %v1168_v6 = vpop.permute.xlu1 %1167  ;;  %2014 = vmatprep.mubr.msk.bf16.mxu0 %vm2436_vm1, %v2435_v15 }
 0x56b   :  { %v1173_v7 = vsel %vm371_vm3, %v1168_v6, 0 }
 0x56c   :  { %2013 = vmatpush3.bf16.msra.mxu0 %v1173_v7 }
 0x56d   :  { %2026 = vmatprep.subr.bf16.mxu0 %v2435_v15 }
 0x574   :  { %v2153_v8 = vpop.eup %2152 }
 0x575   :  { %v1165_v9 = vmul.f32 %v2153_v8, %v2720_v38 }
 0x577   :  { %v1166_v10 = vpack.c.bf16 %v1165_v9, %v1165_v9 }
 0x579   :  { %2015 = vmatmul.mubr.msk.bf16.vlgmr.msra.gmra.mxu0 %vm307_vm2, %v1166_v10 }
 0x57a   :  { %2030 = vmatprep.mubr.msk.bf16.mxu0 %vm2436_vm1, %v2435_v15 }
 0x5bf   :  { %v409_v11 = vpop.f32.mrf.mxu0 }
 0x5c0   :  { %415 = vst.msk [vmem:[#allocation2] sm:$0xff] %vm307_vm2, %v409_v11 }
 0x5c1   :  { %v1932_v12 = vpop.f32.mrf.mxu0 }
 0x5c2   :  { %v2090_v12 = vld [vmem:[#allocation17 + $0x8] sm:$0xff]  }
 0x5c3   :  { %v412_v13 = vpop.f32.mrf.mxu0  ;;  %2027 = vmatpush3.bf16.msra.mxu0 %v2090_v12  ;;  %v2106_v12 = vld [vmem:[%s2888_s13 + $0x38] ss:$24 sps:$4 sm:$0xff]  }
 0x5c4   :  { %v2091_v13 = vld [vmem:[#allocation17] sm:$0xff]   ;;  %2028 = vmatprep.subr.bf16.mxu0 %v2435_v15 }
 0x5c5   :  { %v1933_v14 = vpop.f32.mrf.mxu0 }
 0x5c7   :  { %v520_v16 = vpop.f32.mrf.mxu0  ;;  %2029 = vmatpush3.bf16.msra.mxu0 %v2091_v13 }
 0x5c8   :  { %527 = vrot.lane.b32.xlu0 %v520_v16, %s2427_s18 }
 0x5c9   :  { %v1944_v17 = vpop.f32.mrf.mxu0 }
 0x5cb   :  { %v523_v18 = vpop.f32.mrf.mxu0 }
 0x5cd   :  { %v1945_v19 = vpop.f32.mrf.mxu0 }
 0x5f4   :  { %v636_v20 = vpop.f32.mrf.mxu0 }
 0x5f5   :  { %643 = vrot.lane.b32.xlu0 %v636_v20, %s2447_s30 }
 0x5f6   :  { %v1956_v21 = vpop.f32.mrf.mxu0 }
 0x5f8   :  { %v639_v22 = vpop.f32.mrf.mxu0 }
 0x5fa   :  { %v1957_v23 = vpop.f32.mrf.mxu0 }
 0x5fb   :  { %v1832_v23 = vld [vmem:[#allocation14] ss:$0 sm:$0xff] }
 0x5fc   :  { %v752_v24 = vpop.f32.mrf.mxu0 }
 0x5fd   :  { %759 = vrot.lane.b32.xlu0 %v752_v24, %s2448_s16 }
 0x5fe   :  { %v1968_v25 = vpop.f32.mrf.mxu0 }
 0x600   :  { %v755_v38 = vpop.f32.mrf.mxu0 }
 0x602   :  { %v1969_v26 = vpop.f32.mrf.mxu0 }
 0x603   :  { %v1833_v26 = vld [vmem:[#allocation15] ss:$0 sm:$0xff] }
 0x604   :  { %v868_v27 = vpop.f32.mrf.mxu0 }
 0x605   :  { %874 = vst.msk [vmem:[#allocation2 + $0x8] sm:$0xff] %vm307_vm2, %v868_v27 }
 0x606   :  { %v1980_v28 = vpop.f32.mrf.mxu0 }
 0x608   :  { %v871_v29 = vpop.f32.mrf.mxu0 }
 0x60a   :  { %v1981_v30 = vpop.f32.mrf.mxu0 }
 0x60c   :  { %v979_v31 = vpop.f32.mrf.mxu0 }
 0x60d   :  { %986 = vrot.lane.b32.xlu1 %v979_v31, %s2427_s18  ;;  %v2092_v31 = vld [vmem:[%s2886_s11 + $0x38] sm:$0xff]  }
 0x60e   :  { %v1992_v32 = vpop.f32.mrf.mxu0 }
 0x60f   :  { %v2093_v32 = vld [vmem:[%s2886_s11 + $0x30] sm:$0xff]  }
 0x610   :  { %v982_v33 = vpop.f32.mrf.mxu0 }
 0x611   :  { %v2094_v33 = vld [vmem:[%s2886_s11 + $0x28] sm:$0xff]  }
 0x612   :  { %v1993_v34 = vpop.f32.mrf.mxu0 }
 0x613   :  { %v2095_v34 = vld [vmem:[%s2886_s11 + $0x20] sm:$0xff]  }
 0x629   :  { %v1094_v35 = vpop.f32.mrf.mxu0 }
 0x62a   :  { %1101 = vrot.lane.b32.xlu1 %v1094_v35, %s2447_s30  ;;  %v2096_v35 = vld [vmem:[%s2886_s11 + $0x18] sm:$0xff]  }
 0x62b   :  { %v2004_v36 = vpop.f32.mrf.mxu0 }
 0x62c   :  { %v2097_v36 = vld [vmem:[%s2886_s11 + $0x10] sm:$0xff]  }
 0x62d   :  { %v1097_v42 = vpop.f32.mrf.mxu0 }
 0x62e   :  { %v2098_v42 = vld [vmem:[%s2886_s11 + $0x8] sm:$0xff]  }
 0x62f   :  { %v2005_v39 = vpop.f32.mrf.mxu0 }
 0x630   :  { %v1834_v39 = vld [vmem:[#allocation18] ss:$0 sm:$0xff] }
 0x639   :  { %v1209_v41 = vpop.f32.mrf.mxu0 }
 0x63a   :  { %v528_v43 = vpop.permute.xlu0 %527  ;;  %1216 = vrot.lane.b32.xlu1 %v1209_v41, %s2448_s16 }
 0x63b   :  { %531 = vst.msk [vmem:[#allocation2] sm:$0xff] %vm530_vm4, %v528_v43  ;;  %v2016_v44 = vpop.f32.mrf.mxu0 }
 0x63d   :  { %v1212_v45 = vpop.f32.mrf.mxu0 }
 0x63f   :  { %v2017_v46 = vpop.f32.mrf.mxu0 }
 0x667   :  { %v644_v47 = vpop.permute.xlu0 %643 }
 0x668   :  { %647 = vst.msk [vmem:[#allocation2] sm:$0xff] %vm646_vm5, %v644_v47 }
 0x66f   :  { %v760_v48 = vpop.permute.xlu0 %759 }
 0x670   :  { %763 = vst.msk [vmem:[#allocation2] sm:$0xff] %vm762_vm6, %v760_v48 }
 0x677   :  { %v1220_v52 = vld [vmem:[#allocation2] sm:$0xff] }
 0x67f   :  { %v987_v49 = vpop.permute.xlu1 %986 }
 0x680   :  { %989 = vst.msk [vmem:[#allocation2 + $0x8] sm:$0xff] %vm530_vm4, %v987_v49 }
 0x69c   :  { %v1102_v50 = vpop.permute.xlu1 %1101 }
 0x69d   :  { %1104 = vst.msk [vmem:[#allocation2 + $0x8] sm:$0xff] %vm646_vm5, %v1102_v50 }
 0x6ac   :  { %v1217_v51 = vpop.permute.xlu1 %1216 }
 0x6ad   :  { %1219 = vst.msk [vmem:[#allocation2 + $0x8] sm:$0xff] %vm762_vm6, %v1217_v51 }
 0x6b4   :  { %v1221_v53 = vld [vmem:[#allocation2 + $0x8] sm:$0xff] }
 0x6b5   :  { %v1222_v54 = vpack.c.bf16 %v1221_v53, %v1220_v52 }
 0x6b7   :  { %2023 = vmatmul.mubr.msk.bf16.vlgmr.msra.gmra.mxu1 %vm189_vm0, %v1222_v54 }
 0x6b8   :  { %2050 = vmatprep.mubr.msk.bf16.mxu1 %vm2436_vm1, %v2435_v15  ;;  %2035 = vmatpush3.bf16.msra.mxu1 %v2092_v31 }
 0x6b9   :  { %2036 = vmatprep.subr.bf16.mxu1 %v2435_v15 }
 0x6bc   :  { %2037 = vmatpush3.bf16.msra.mxu1 %v2093_v32 }
 0x6bd   :  { %2038 = vmatprep.subr.bf16.mxu1 %v2435_v15 }
 0x6c0   :  { %2039 = vmatpush3.bf16.msra.mxu1 %v2094_v33 }
 0x6c1   :  { %2040 = vmatprep.subr.bf16.mxu1 %v2435_v15 }
 0x6c4   :  { %2041 = vmatpush3.bf16.msra.mxu1 %v2095_v34 }
 0x6c5   :  { %2042 = vmatprep.subr.bf16.mxu1 %v2435_v15 }
 0x6c8   :  { %2043 = vmatpush3.bf16.msra.mxu1 %v2096_v35 }
 0x6c9   :  { %2044 = vmatprep.subr.bf16.mxu1 %v2435_v15 }
 0x6cc   :  { %2045 = vmatpush3.bf16.msra.mxu1 %v2097_v36 }
 0x6cd   :  { %2046 = vmatprep.subr.bf16.mxu1 %v2435_v15 }
 0x6d0   :  { %2047 = vmatpush3.bf16.msra.mxu1 %v2098_v42 }
 0x6d1   :  { %2048 = vmatprep.subr.bf16.mxu1 %v2435_v15 }
 0x6d4   :  { %2049 = vmatpush3.bf16.msra.mxu1 %v2099_v37 }
 0x777   :  { %v1283_v56 = vpop.f32.mrf.mxu1 }
 0x778   :  { %v1284_v57 = vadd.f32 %v1828_v55, %v1283_v56 }
 0x779   :  { %v2024_v58 = vpop.f32.mrf.mxu1 }
 0x77a   :  { %v2781_v59 = vadd.f32 %v1284_v57, %v2575_v0 }
 0x77b   :  { %v1286_v60 = vpop.f32.mrf.mxu1 }
 0x77c   :  { %v1287_v61 = vadd.f32 %v1828_v55, %v1286_v60  ;;  %v1292_v62 = vsel %vm189_vm0, %v2781_v59, 0.0  ;;  %v2102_v60 = vld [vmem:[%s2888_s13 + $0x34] ss:$24 sps:$4 sm:$0xff]  }
 0x77d   :  { %1293 = vadd.xlane.f32.xlu0 %v1292_v62  ;;  %v2025_v63 = vpop.f32.mrf.mxu1  ;;  %1655 = vmatprep.subr.bf16.mxu0 %v2102_v60  ;;  %v2105_v62 = vld [vmem:[%s2888_s13 + $0x4] ss:$24 sps:$4 sm:$0xff]  }
 0x77e   :  { %v2786_v2 = vadd.f32 %v1287_v61, %v2577_v1  ;;  %v2100_v61 = vld [vmem:[%s2888_s13 + $0x30] ss:$24 sps:$4 sm:$0xff]   ;;  %v2103_v63 = vld [vmem:[%s2888_s13] ss:$24 sps:$4 sm:$0xff]  }
 0x780   :  { %v1295_v3 = vsel %vm189_vm0, %v2786_v2, 0.0 }
 0x781   :  { %1296 = vadd.xlane.f32.xlu1 %v1295_v3  ;;  %v2449_v3 = vmov 0  }
 0x806   :  { %v1294_v4 = vpop.xlane.xlu0 %1293 }
 0x807   :  { %v1298_v5 = vmul.f32 0.03125, %v1294_v4  ;;  %v2108_v4 = vld [vmem:[%s2888_s13 + $0x3c] ss:$24 sps:$4 sm:$0xff]  }
 0x809   :  { %v1300_v6 = vsub.f32 %v2781_v59, %v1298_v5  ;;  %v1840_v5 = vld [vmem:[#allocation20] ss:$0 sm:$0xff] }
 0x80a   :  { %v1297_v0 = vpop.xlane.xlu1 %1296 }
 0x80b   :  { %v1299_v7 = vmul.f32 0.03125, %v1297_v0  ;;  %v1302_v8 = vmul.f32 %v1300_v6, %v1300_v6 }
 0x80d   :  { %v1301_v9 = vsub.f32 %v2786_v2, %v1299_v7  ;;  %v1304_v10 = vsel %vm189_vm0, %v1302_v8, 0.0 }
 0x80e   :  { %1305 = vadd.xlane.f32.xlu0 %v1304_v10 }
 0x80f   :  { %v1303_v11 = vmul.f32 %v1301_v9, %v1301_v9 }
 0x811   :  { %v1307_v1 = vsel %vm189_vm0, %v1303_v11, 0.0 }
 0x812   :  { %1308 = vadd.xlane.f32.xlu0 %v1307_v1 }
 0x897   :  { %v1306_v14 = vpop.xlane.xlu0 %1305 }
 0x898   :  { %v1310_v16 = vmul.f32 0.03125, %v1306_v14  ;;  %v2111_v14 = vld [vmem:[%s2888_s13 + $0xc] ss:$24 sps:$4 sm:$0xff]  }
 0x89a   :  { %v1312_v17 = vadd.f32 1e-05, %v1310_v16  ;;  %v2109_v16 = vld [vmem:[%s2888_s13 + $0x8] ss:$24 sps:$4 sm:$0xff]  }
 0x89b   :  { %v1309_v18 = vpop.xlane.xlu0 %1308 }
 0x89c   :  { %2154 = vrsqrt.f32 %v1312_v17  ;;  %v1311_v19 = vmul.f32 0.03125, %v1309_v18  ;;  %v2117_v17 = vld [vmem:[%s2888_s13 + $0x14] ss:$24 sps:$4 sm:$0xff]   ;;  %v2115_v18 = vld [vmem:[%s2888_s13 + $0x10] ss:$24 sps:$4 sm:$0xff]  }
 0x89e   :  { %v1313_v20 = vadd.f32 1e-05, %v1311_v19  ;;  %v1550_v19 = vlaneseq }
 0x8a0   :  { %2156 = vrsqrt.f32 %v1313_v20  ;;  %v1551_v20 = vshrl.u32 %v1550_v19, 7 }
 0x8a9   :  { %v2155_v21 = vpop.eup %2154 }
 0x8aa   :  { %v1316_v22 = vmul.f32 %v2155_v21, %v1300_v6  ;;  %v1552_v21 = vsub.s32 0, %v1551_v20 }
 0x8ac   :  { %v1325_v38 = vmul.f32 %v1832_v23, %v1316_v22  ;;  %v1548_v22 = vld [vmem:[%s2889_s14] sm:$0x3f] }
 0x8ad   :  { %v2157_v24 = vpop.eup %2156 }
 0x8ae   :  { %v1317_v25 = vmul.f32 %v2157_v24, %v1301_v9  ;;  %v1334_v28 = vadd.f32 %v1833_v26, %v1325_v38  ;;  %v1553_v24 = vrot.slane %v1548_v22, %v1552_v21 }
 0x8b0   :  { %v1326_v27 = vmul.f32 %v1832_v23, %v1317_v25  ;;  %v1556_v23 = vsub.s32 1, %v1551_v20 }
 0x8b2   :  { %v1335_v29 = vadd.f32 %v1833_v26, %v1326_v27  ;;  %v1557_v25 = vrot.slane %v1548_v22, %v1556_v23  ;;  %v1560_v27 = vsub.s32 2, %v1551_v20 }
 0x8b4   :  { %v1336_v30 = vpack.c.bf16 %v1335_v29, %v1334_v28  ;;  %v1561_v33 = vrot.slane %v1548_v22, %v1560_v27 }
 0x8b6   :  { %2031 = vmatmul.mubr.msk.bf16.vlgmr.msra.gmra.mxu0 %vm189_vm0, %v1336_v30  ;;  %v1564_v30 = vsub.s32 3, %v1551_v20 }
 0x8b7   :  { %1656 = vmatpush1.bf16.msra.mxu0 %v2100_v61  ;;  %1675 = vmatprep.mubr.bf16.mxu0 %v2449_v3 }
 0x8b8   :  { %1657 = vmatprep.subr.bf16.mxu0 %v2105_v62  ;;  %v1565_v36 = vrot.slane %v1548_v22, %v1564_v30 }
 0x8bb   :  { %1658 = vmatpush1.bf16.msra.mxu0 %v2103_v63 }
 0x8bc   :  { %1698 = vmatprep.subr.bf16.mxu0 %v2108_v4 }
 0x976   :  { %v1397_v40 = vpop.f32.mrf.mxu0 }
 0x977   :  { %v1398_v41 = vadd.f32 %v1834_v39, %v1397_v40 }
 0x978   :  { %v2032_v43 = vpop.f32.mrf.mxu0 }
 0x979   :  { %v1838_v44 = vmul.f32 -1.702, %v1398_v41  ;;  %v1572_v43 = vsub.s32 5, %v1551_v20 }
 0x97a   :  { %v1400_v45 = vpop.f32.mrf.mxu0 }
 0x97b   :  { %v1408_v46 = vmul.f32 1.442695, %v1838_v44  ;;  %v1401_v47 = vadd.f32 %v1834_v39, %v1400_v45  ;;  %v1568_v39 = vsub.s32 4, %v1551_v20 }
 0x97c   :  { %v2033_v48 = vpop.f32.mrf.mxu0 }
 0x97d   :  { %2158 = vpow2.f32 %v1408_v46  ;;  %v1839_v49 = vmul.f32 -1.702, %v1401_v47  ;;  %v1569_v46 = vrot.slane %v1548_v22, %v1568_v39 }
 0x97f   :  { %v1410_v50 = vmul.f32 1.442695, %v1839_v49  ;;  %v1573_v49 = vrot.slane %v1548_v22, %v1572_v43 }
 0x981   :  { %2160 = vpow2.f32 %v1410_v50 }
 0x98a   :  { %v2159_v51 = vpop.eup %2158 }
 0x98b   :  { %v1412_v15 = vadd.f32 1.0, %v2159_v51 }
 0x98d   :  { %2162 = vrcp.f32 %v1412_v15 }
 0x98e   :  { %v2161_v52 = vpop.eup %2160 }
 0x98f   :  { %v1413_v53 = vadd.f32 1.0, %v2161_v52 }
 0x991   :  { %2164 = vrcp.f32 %v1413_v53 }
 0x99a   :  { %v2163_v54 = vpop.eup %2162 }
 0x99b   :  { %v1418_v56 = vmul.f32 %v2163_v54, %v1398_v41 }
 0x99e   :  { %v2165_v55 = vpop.eup %2164 }
 0x99f   :  { %v1419_v57 = vmul.f32 %v2165_v55, %v1401_v47 }
 0x9a1   :  { %v1420_v58 = vpack.c.bf16 %v1419_v57, %v1418_v56 }
 0x9a3   :  { %2051 = vmatmul.mubr.bf16.vlgmr.msra.gmra.mxu1 %v1420_v58 }
 0xa63   :  { %v1526_v6 = vpop.f32.mrf.mxu1 }
 0xa64   :  { %v1527_v7 = vadd.f32 %v1840_v5, %v1526_v6 }
 0xa65   :  { %v2052_v0 = vpop.f32.mrf.mxu1 }
 0xa66   :  { %v1533_v11 = vadd.f32 %v1527_v7, %v2781_v59  ;;  %v2114_v59 = vld [vmem:[%s2888_s13 + $0x44] ss:$24 sps:$4 sm:$0xff]  }
 0xa67   :  { %v1529_v8 = vpop.f32.mrf.mxu1 }
 0xa68   :  { %v1530_v9 = vadd.f32 %v1840_v5, %v1529_v8 }
 0xa69   :  { %v2053_v10 = vpop.f32.mrf.mxu1 }
 0xa6a   :  { %v1534_v1 = vadd.f32 %v1530_v9, %v2786_v2  ;;  %v2112_v2 = vld [vmem:[%s2888_s13 + $0x40] ss:$24 sps:$4 sm:$0xff]   ;;  %s2450_s13 = smov [#allocation21]  }
 0xa6b   :  { %s1789_s14 = sshll.u32 %s2450_s13, 4  ;;  %s1790_s14 = int_to_ptr.vmem [resolvable:$true] %s1789_s14 }
 0xa6c   :  { %v1535_v13 = vpack.c.bf16 %v1534_v1, %v1533_v11  ;;  %s2386_s1 = scalar_lea.vmem %s1790_s14, 1536  ;;  %p2391_p0 = scmp.lt.s32.totalorder %s1790_s14, %s1790_s14 }
 0xa6d   :  { %p2387_p13 = scmp.ne.s32.totalorder %s1790_s14, %s2386_s1  ;;  %p2392_p1 = scmp.lt.s32.totalorder %s2386_s1, %s2386_s1 }
 0xa6e   :  { %1861 = vmatmul.mubr.msk.bf16.vlgmr.msra.gmra.mxu0 %vm189_vm0, %v1535_v13 }
 0xa6f   :  { %1699 = vmatpush1.bf16.msra.mxu0 %v2106_v12  ;;  %1718 = vmatprep.mubr.bf16.mxu0 %v2449_v3  ;;  %p2393_p2 = por %p2392_p1, %p2391_p0 }
 0xa70   :  { %1700 = vmatprep.subr.bf16.mxu0 %v2111_v14 }
 0xa71   :  { %p2394_p3 = pnand %p2393_p2, %p2387_p13 }
 0xa73   :  { %1701 = vmatpush1.bf16.msra.mxu0 %v2109_v16 }
 0xa74   :  { %1741 = vmatprep.subr.bf16.mxu0 %v2114_v59 }
 0xa76   :  { %1862 = vmatmul.mubr.msk.bf16.vlgmr.msra.gmra.mxu0 %vm189_vm0, %v1535_v13 }
 0xa77   :  { %1742 = vmatpush1.bf16.msra.mxu0 %v2112_v2  ;;  %1761 = vmatprep.mubr.bf16.mxu0 %v2449_v3 }
 0xa78   :  { %1743 = vmatprep.subr.bf16.mxu0 %v2117_v17 }
 0xa7b   :  { %1744 = vmatpush1.bf16.msra.mxu0 %v2115_v18 }
 0xa7e   :  { %1863 = vmatmul.mubr.msk.bf16.vlgmr.msra.gmra.mxu0 %vm189_vm0, %v1535_v13 }
 0xb2e   :  { %v1677_v38 = vpop.f32.mrf.mxu0 }
 0xb2f   :  { %v1678_v26 = vadd.f32 %v1677_v38, %v1553_v24 }
 0xb30   :  { %v1679_v28 = vpop.f32.mrf.mxu0 }
 0xb31   :  { %1772 = vst [vmem:[#allocation21] sm:$0xff] %v1678_v26  ;;  %v1680_v29 = vadd.f32 %v1679_v28, %v1557_v25 }
 0xb32   :  { %v1681_v31 = vpop.f32.mrf.mxu0 }
 0xb33   :  { %1773 = vst [vmem:[#allocation21 + $0x8] sm:$0xff] %v1680_v29  ;;  %v1682_v32 = vadd.f32 %v1681_v31, %v1553_v24 }
 0xb34   :  { %v1683_v34 = vpop.f32.mrf.mxu0 }
 0xb35   :  { %1778 = vst [vmem:[#allocation21 + $0x30] sm:$0xff] %v1682_v32  ;;  %v1684_v35 = vadd.f32 %v1683_v34, %v1557_v25 }
 0xb36   :  { %v1720_v42 = vpop.f32.mrf.mxu0 }
 0xb37   :  { %1779 = vst [vmem:[#allocation21 + $0x38] sm:$0xff] %v1684_v35  ;;  %v1721_v37 = vadd.f32 %v1720_v42, %v1561_v33 }
 0xb38   :  { %v1722_v40 = vpop.f32.mrf.mxu0 }
 0xb39   :  { %1774 = vst [vmem:[#allocation21 + $0x10] sm:$0xff] %v1721_v37  ;;  %v1723_v41 = vadd.f32 %v1722_v40, %v1565_v36 }
 0xb3a   :  { %v1724_v44 = vpop.f32.mrf.mxu0 }
 0xb3b   :  { %1775 = vst [vmem:[#allocation21 + $0x18] sm:$0xff] %v1723_v41  ;;  %v1725_v45 = vadd.f32 %v1724_v44, %v1561_v33 }
 0xb3c   :  { %v1726_v47 = vpop.f32.mrf.mxu0 }
 0xb3d   :  { %1780 = vst [vmem:[#allocation21 + $0x40] sm:$0xff] %v1725_v45  ;;  %v1727_v48 = vadd.f32 %v1726_v47, %v1565_v36 }
 0xb3e   :  { %v1763_v50 = vpop.f32.mrf.mxu0 }
 0xb3f   :  { %1781 = vst [vmem:[#allocation21 + $0x48] sm:$0xff] %v1727_v48  ;;  %v1764_v51 = vadd.f32 %v1763_v50, %v1569_v46 }
 0xb40   :  { %v1765_v15 = vpop.f32.mrf.mxu0 }
 0xb41   :  { %1776 = vst [vmem:[#allocation21 + $0x20] sm:$0xff] %v1764_v51  ;;  %v1766_v52 = vadd.f32 %v1765_v15, %v1573_v49 }
 0xb42   :  { %v1767_v53 = vpop.f32.mrf.mxu0 }
 0xb43   :  { %1777 = vst [vmem:[#allocation21 + $0x28] sm:$0xff] %v1766_v52  ;;  %v1768_v54 = vadd.f32 %v1767_v53, %v1569_v46 }
 0xb44   :  { %v1769_v55 = vpop.f32.mrf.mxu0 }
 0xb45   :  { %1782 = vst [vmem:[#allocation21 + $0x50] sm:$0xff] %v1768_v54  ;;  %v1770_v56 = vadd.f32 %v1769_v55, %v1573_v49 }
 0xb47   :  { %1783 = vst [vmem:[#allocation21 + $0x58] sm:$0xff] %v1770_v56 }
 0xb48   :  { %2397 = shalt.err (!%p2394_p3)
}
 0xb49   :  { %s2451_s11 = smov 768  }
 0xb4a   :  { %1795 = dma.vmem_to_hbm [thread:$0]  %s1790_s14, 1536, %s2890_s15, [#allocation5], %s2451_s11, %s2451_s11, %s2445_s3  }
 0xb4b   :  { %2418 = dma.done.wait [#allocation5], 1536  }
 0xb4c   :  { %2419 = vsyncadd [#allocation5], 4294965760 }
 0xb4d   :  { %1799 = vsyncpa [#allocation4], 1 }
 0xb4e   :  { %1800 = vsyncpa [#allocation7], 1 }
 0xb4f   :  { %1801 = vsyncpa [#allocation10], 1 }
 0xb50   :  { %1802 = vsyncpa [#allocation13], 1 }
 0xb51   :  { %1803 = vsyncpa [#allocation16], 1 }
 0xb52   :  { %1804 = vsyncpa [#allocation19], 1 }
 0xb53   :  { %1805 = vsyncpa [#allocation5], 1 }

</bundles_post_ra>
